<compile_context>
chip_gen: v6e
topology: v6e:2x2x1
jax: 0.10.0
libtpu: 0.0.40
codegen_flags: <defaults>
</compile_context>

<pallas_src>
import functools
from types import SimpleNamespace

import jax
import jax.numpy as jnp
from jax.experimental import pallas as pl
from jax.experimental.pallas import tpu as pltpu

_VMEM_LIMIT = 32 * 1024 * 1024


# ----------------------------------------------------------------------------
# Shared conv helpers: row-tiled, flat "tap offset" layout
# ----------------------------------------------------------------------------
def _conv_geometry(H, W, Cin, Cout, k):
    p = k // 2
    Wp = W + 2 * p
    # pick the row tile so one input/output block stays around ~2 MiB
    per_row = Wp * max(2 * Cin, 4 * Cout)
    TH = int(max(8, min(H, (2 << 20) // max(per_row, 1))))
    T = -(-H // TH)                    # number of row tiles
    rows = TH * Wp                     # flat output rows per tile
    Min = (TH + k) * Wp                # flat input rows per tile (incl. halo)
    return p, Wp, TH, T, rows, Min


def _tile_conv_input(x, k, p, TH, T, Wp, Min):
    """(N,H,W,Cin) -> (N,T,Min,Cin) bf16 flat row tiles (halo rows included)."""
    N, H, W, Cin = x.shape
    Hpad = T * TH
    xp = jnp.pad(x, ((0, 0), (p, Hpad - H + p + 1), (p, p), (0, 0)))
    tiles = [xp[:, t * TH:t * TH + TH + k] for t in range(T)]
    xt = jnp.stack(tiles, axis=1).reshape(N, T, Min, Cin)
    return xt.astype(jnp.bfloat16)


def _to_out_layout(t, TH, T, Wp):
    """(N,H,W,C) -> conv-output flat layout (N,T,TH*Wp,C); pad cols are garbage."""
    N, H, W, C = t.shape
    tp = jnp.pad(t, ((0, 0), (0, T * TH - H), (0, Wp - W), (0, 0)))
    return tp.reshape(N, T, TH * Wp, C)


def _from_out_layout(o, H, W, Wp, TH):
    N, T, _, C = o.shape
    return o.reshape(N, T * TH, Wp, C)[:, :H, :W, :]


def _im2col_weight(w):
    """PyTorch (Cout,Cin,k,k) -> (k*k*Cin, Cout) bf16 matching the tap concat."""
    Cout, Cin, k, _ = w.shape
    return jnp.transpose(w, (2, 3, 1, 0)).reshape(k * k * Cin, Cout).astype(jnp.bfloat16)


def _im2col_slab(x, k, Wp, rows):
    """Concatenate the k*k shifted flat views along the contraction dim."""
    taps = []
    for t in range(k * k):
        off = (t // k) * Wp + (t % k)
        taps.append(x[off:off + rows, :])
    return jnp.concatenate(taps, axis=-1)          # (rows, k*k*Cin)


# ----------------------------------------------------------------------------
# Pallas kernel 1: generic conv (single wide matmul + bias [+ add] [+ ReLU])
# ----------------------------------------------------------------------------
def _conv_kernel(*refs, k, Wp, rows, relu, has_add):
    if has_add:
        x_ref, w_ref, b_ref, a_ref, o_ref = refs
    else:
        x_ref, w_ref, b_ref, o_ref = refs
        a_ref = None
    slab = _im2col_slab(x_ref[...], k, Wp, rows)           # (rows, k*k*Cin) bf16
    acc = jnp.dot(slab, w_ref[...], preferred_element_type=jnp.float32)
    acc = acc + b_ref[...]
    if has_add:
        acc = acc + a_ref[...].astype(jnp.float32)
    if relu:
        acc = jnp.maximum(acc, 0.0)
    o_ref[...] = acc.astype(o_ref.dtype)


def conv2d_nhwc(x, w, b, *, relu=False, add=None, out_dtype=jnp.float32):
    """NHWC conv, stride 1, padding k//2; optional fused residual add + ReLU."""
    N, H, W, Cin = x.shape
    Cout, _, k, _ = w.shape
    p, Wp, TH, T, rows, Min = _conv_geometry(H, W, Cin, Cout, k)
    xt = _tile_conv_input(x, k, p, TH, T, Wp, Min)
    wc = _im2col_weight(w)
    b2 = b.reshape(1, Cout).astype(jnp.float32)
    ins = [xt, wc, b2]
    in_specs = [
        pl.BlockSpec((None, None, Min, Cin), lambda n, t: (n, t, 0, 0)),
        pl.BlockSpec((k * k * Cin, Cout), lambda n, t: (0, 0)),
        pl.BlockSpec((1, Cout), lambda n, t: (0, 0)),
    ]
    if add is not None:
        ins.append(_to_out_layout(add.astype(jnp.float32), TH, T, Wp))
        in_specs.append(pl.BlockSpec((None, None, rows, Cout),
                                     lambda n, t: (n, t, 0, 0)))
    out = pl.pallas_call(
        functools.partial(_conv_kernel, k=k, Wp=Wp, rows=rows, relu=relu,
                          has_add=add is not None),
        out_shape=jax.ShapeDtypeStruct((N, T, rows, Cout), out_dtype),
        grid=(N, T),
        in_specs=in_specs,
        out_specs=pl.BlockSpec((None, None, rows, Cout), lambda n, t: (n, t, 0, 0)),
        compiler_params=pltpu.CompilerParams(
            dimension_semantics=("parallel", "parallel"),
            vmem_limit_bytes=_VMEM_LIMIT),
    )(*ins)
    return _from_out_layout(out, H, W, Wp, TH)


# ----------------------------------------------------------------------------
# Pallas kernel 2: fused conv_match (3x3) + conv_assembly (1x1), no zero taps
# ----------------------------------------------------------------------------
def _conv_ma_kernel(x_ref, wm_ref, bm_ref, wa_ref, ba_ref, xo_ref, yo_ref, *,
                    k, Wp, rows):
    x = x_ref[...]
    slab = _im2col_slab(x, k, Wp, rows)
    xm = jnp.dot(slab, wm_ref[...], preferred_element_type=jnp.float32) + bm_ref[...]
    p = k // 2
    center = x[p * Wp + p:p * Wp + p + rows, :]            # 1x1 conv = center tap
    ya = jnp.dot(center, wa_ref[...], preferred_element_type=jnp.float32) + ba_ref[...]
    xo_ref[...] = xm.astype(xo_ref.dtype)
    yo_ref[...] = ya.astype(yo_ref.dtype)


def conv_match_assembly(x, wm, bm, wa, ba):
    N, H, W, Cin = x.shape
    Cm, Ca = wm.shape[0], wa.shape[0]
    k = 3
    p, Wp, TH, T, rows, Min = _conv_geometry(H, W, Cin, Cm + Ca, k)
    xt = _tile_conv_input(x, k, p, TH, T, Wp, Min)
    wmc = _im2col_weight(wm)
    bm2 = bm.reshape(1, Cm).astype(jnp.float32)
    wac = jnp.transpose(wa[:, :, 0, 0], (1, 0)).astype(jnp.bfloat16)
    ba2 = ba.reshape(1, Ca).astype(jnp.float32)
    xo, yo = pl.pallas_call(
        functools.partial(_conv_ma_kernel, k=k, Wp=Wp, rows=rows),
        out_shape=(jax.ShapeDtypeStruct((N, T, rows, Cm), jnp.bfloat16),
                   jax.ShapeDtypeStruct((N, T, rows, Ca), jnp.bfloat16)),
        grid=(N, T),
        in_specs=[
            pl.BlockSpec((None, None, Min, Cin), lambda n, t: (n, t, 0, 0)),
            pl.BlockSpec((k * k * Cin, Cm), lambda n, t: (0, 0)),
            pl.BlockSpec((1, Cm), lambda n, t: (0, 0)),
            pl.BlockSpec((Cin, Ca), lambda n, t: (0, 0)),
            pl.BlockSpec((1, Ca), lambda n, t: (0, 0)),
        ],
        out_specs=(pl.BlockSpec((None, None, rows, Cm), lambda n, t: (n, t, 0, 0)),
                   pl.BlockSpec((None, None, rows, Ca), lambda n, t: (n, t, 0, 0))),
        compiler_params=pltpu.CompilerParams(
            dimension_semantics=("parallel", "parallel"),
            vmem_limit_bytes=_VMEM_LIMIT),
    )(xt, wmc, bm2, wac, ba2)
    return (_from_out_layout(xo, H, W, Wp, TH),
            _from_out_layout(yo, H, W, Wp, TH))


# ----------------------------------------------------------------------------
# Pallas kernel 3: conv4 + du = u + res2 + UBlock update, all fused
# ----------------------------------------------------------------------------
def _conv_update_kernel(x_ref, w_ref, b_ref, u_ref, xin_ref, p_ref,
                        du_ref, un_ref, *, k, Wp, rows):
    slab = _im2col_slab(x_ref[...], k, Wp, rows)
    res2 = jnp.dot(slab, w_ref[...], preferred_element_type=jnp.float32) + b_ref[...]
    u = u_ref[...]
    du = u + res2
    p1 = p_ref[0]
    p2 = p_ref[1]
    du_ref[...] = du
    un_ref[...] = u - p1 * (u - du) - p2 * (xin_ref[...] - u)


def conv_final_update(info, w, b, u_nhwc, x_nhwc, p1, p2):
    N, H, W, Cin = info.shape
    Cout = w.shape[0]
    k = 3
    p, Wp, TH, T, rows, Min = _conv_geometry(H, W, Cin, max(Cout, Cin), k)
    xt = _tile_conv_input(info, k, p, TH, T, Wp, Min)
    wc = _im2col_weight(w)
    b2 = b.reshape(1, Cout).astype(jnp.float32)
    u_flat = _to_out_layout(u_nhwc.astype(jnp.float32), TH, T, Wp)
    x_flat = _to_out_layout(x_nhwc.astype(jnp.float32), TH, T, Wp)
    pvec = jnp.concatenate([jnp.reshape(p1, (1,)),
                            jnp.reshape(p2, (1,))]).astype(jnp.float32)
    du, un = pl.pallas_call(
        functools.partial(_conv_update_kernel, k=k, Wp=Wp, rows=rows),
        out_shape=(jax.ShapeDtypeStruct((N, T, rows, Cout), jnp.float32),
                   jax.ShapeDtypeStruct((N, T, rows, Cout), jnp.float32)),
        grid=(N, T),
        in_specs=[
            pl.BlockSpec((None, None, Min, Cin), lambda n, t: (n, t, 0, 0)),
            pl.BlockSpec((k * k * Cin, Cout), lambda n, t: (0, 0)),
            pl.BlockSpec((1, Cout), lambda n, t: (0, 0)),
            pl.BlockSpec((None, None, rows, 1), lambda n, t: (n, t, 0, 0)),
            pl.BlockSpec((None, None, rows, 1), lambda n, t: (n, t, 0, 0)),
            pl.BlockSpec(memory_space=pltpu.MemorySpace.SMEM),
        ],
        out_specs=(pl.BlockSpec((None, None, rows, Cout), lambda n, t: (n, t, 0, 0)),
                   pl.BlockSpec((None, None, rows, Cout), lambda n, t: (n, t, 0, 0))),
        compiler_params=pltpu.CompilerParams(
            dimension_semantics=("parallel", "parallel"),
            vmem_limit_bytes=_VMEM_LIMIT),
    )(xt, wc, b2, u_flat, x_flat, pvec)
    return (_from_out_layout(du, H, W, Wp, TH),
            _from_out_layout(un, H, W, Wp, TH))


# ----------------------------------------------------------------------------
# Pallas kernel 4: NLSA chunk attention (each chunk fetched once, concatenated
#                  prev/cur/next keys & values, single-exp online softmax)
# ----------------------------------------------------------------------------
def _nlsa_group_kernel(xq_ref, xk_ref, y_ref, ret_ref, bs_ref):
    # xq/xk: (K, chunk, C) bf16 (xk pre-L2-normalized), y: (K, chunk, Cy) bf16
    # ret:   (K, chunk, Cy) f32, bs: (K, chunk, 1) f32 (logsumexp bucket score)
    K = xq_ref.shape[0]
    # TODO(synk): switch this static unroll to lax.fori_loop for very large K.
    for j in range(K):
        jp = (j - 1) % K
        jn = (j + 1) % K
        q = xq_ref[j]
        keys = jnp.concatenate([xk_ref[j], xk_ref[jp], xk_ref[jn]], axis=0)
        vals = jnp.concatenate([y_ref[j], y_ref[jp], y_ref[jn]], axis=0)
        s = jax.lax.dot_general(q, keys, (((1,), (1,)), ((), ())),
                                preferred_element_type=jnp.float32)  # (chunk,3chunk)
        m = jnp.max(s, axis=-1, keepdims=True)
        e = jnp.exp(s - m)
        denom = jnp.sum(e, axis=-1, keepdims=True)
        pv = jnp.dot(e.astype(jnp.bfloat16), vals,
                     preferred_element_type=jnp.float32)             # (chunk, Cy)
        ret_ref[j] = pv * pl.reciprocal(denom, approx=True)
        bs_ref[j] = m + jnp.log(denom)


def nlsa_chunk_attention(xq_g, xk_g, y_g):
    GH, K, chunk, C = xq_g.shape
    Cy = y_g.shape[-1]
    # TODO(synk): bucket score kept (GH,K,chunk,1); lane-dense store left as follow-up.
    ret, bscore = pl.pallas_call(
        _nlsa_group_kernel,
        out_shape=(jax.ShapeDtypeStruct((GH, K, chunk, Cy), jnp.float32),
                   jax.ShapeDtypeStruct((GH, K, chunk, 1), jnp.float32)),
        grid=(GH,),
        in_specs=[
            pl.BlockSpec((None, K, chunk, C), lambda g: (g, 0, 0, 0)),
            pl.BlockSpec((None, K, chunk, C), lambda g: (g, 0, 0, 0)),
            pl.BlockSpec((None, K, chunk, Cy), lambda g: (g, 0, 0, 0)),
        ],
        out_specs=(pl.BlockSpec((None, K, chunk, Cy), lambda g: (g, 0, 0, 0)),
                   pl.BlockSpec((None, K, chunk, 1), lambda g: (g, 0, 0, 0))),
        compiler_params=pltpu.CompilerParams(
            dimension_semantics=("parallel",),
            vmem_limit_bytes=_VMEM_LIMIT),
    )(xq_g, xk_g, y_g)
    return ret, bscore


# ----------------------------------------------------------------------------
# NonLocalSparseAttention forward (NHWC; LSH glue in JAX, attention in Pallas)
# ----------------------------------------------------------------------------
def nlsa_forward(params, x_nhwc, key, *, n_hashes=4, chunk_size=144, reduction=4,
                 res_scale=1.0):
    N, H, W, Cch = x_nhwc.shape
    C = Cch // reduction

    # Fused match (3x3 -> C) / assembly (1x1 -> Cch) embedding conv, bf16 out.
    x_emb, y_emb = conv_match_assembly(x_nhwc, params["match_w"], params["match_b"],
                                       params["assembly_w"], params["assembly_b"])
    L = H * W
    x_embed = x_emb.reshape(N, L, C)                     # bf16 queries
    y_embed = y_emb.reshape(N, L, Cch)                   # bf16 values

    hash_buckets = min(L // chunk_size + (L // chunk_size) % 2, 128)

    # LSH (random rotations drawn fresh per forward, as in the PyTorch code)
    xe32 = x_embed.astype(jnp.float32)
    rot = jax.random.normal(key, (1, C, n_hashes, hash_buckets // 2), jnp.float32)
    rot = jnp.broadcast_to(rot, (N, C, n_hashes, hash_buckets // 2))
    rv = jnp.einsum("btf,bfhi->bhti", xe32, rot)
    rv = jnp.concatenate([rv, -rv], axis=-1)
    hash_codes = jnp.argmax(rv, axis=-1)
    offsets = (jnp.arange(n_hashes) * hash_buckets).reshape(1, -1, 1)
    hash_codes = (hash_codes + offsets).reshape(N, -1)

    # TODO(synk): argsort/gather-based bucket permutation has no clean Pallas
    # equivalent on TPU; it stays in plain JAX.
    indices = jnp.argsort(hash_codes, axis=-1)
    undo_sort = jnp.argsort(indices, axis=-1)
    mod_indices = indices % L

    # Keys are L2-normalized ONCE here (F.normalize, eps=5e-5) instead of 3x
    # per chunk inside the attention kernel.
    norm = jnp.sqrt(jnp.sum(xe32 * xe32, axis=-1, keepdims=True))
    xk32 = xe32 / jnp.maximum(norm, 5e-5)

    xq_sorted = jnp.take_along_axis(x_embed, mod_indices[:, :, None], axis=1)
    xk_sorted = jnp.take_along_axis(xk32.astype(jnp.bfloat16),
                                    mod_indices[:, :, None], axis=1)
    y_sorted = jnp.take_along_axis(y_embed, mod_indices[:, :, None], axis=1)

    padding = (chunk_size - L % chunk_size) if (L % chunk_size != 0) else 0

    def chunkify(t, Cdim):
        t = t.reshape(N, n_hashes, L, Cdim)
        if padding:
            t = jnp.concatenate([t, t[:, :, -padding:, :]], axis=2)
        return t.reshape(N * n_hashes, -1, chunk_size, Cdim)

    xq_g = chunkify(xq_sorted, C)
    xk_g = chunkify(xk_sorted, C)
    y_g = chunkify(y_sorted, Cch)
    K = xq_g.shape[1]

    ret, bscore = nlsa_chunk_attention(xq_g, xk_g, y_g)

    ret = ret.reshape(N, n_hashes, K * chunk_size, Cch)
    bscore = bscore.reshape(N, n_hashes, K * chunk_size)
    if padding:
        ret = ret[:, :, :L, :]
        bscore = bscore[:, :, :L]
    ret = ret.reshape(N, n_hashes * L, Cch)
    bscore = bscore.reshape(N, n_hashes * L)

    ret = jnp.take_along_axis(ret, undo_sort[:, :, None], axis=1)
    bscore = jnp.take_along_axis(bscore, undo_sort, axis=1)

    ret = ret.reshape(N, n_hashes, L, Cch)
    bscore = bscore.reshape(N, n_hashes, L, 1)
    probs = jax.nn.softmax(bscore, axis=1)
    ret = jnp.sum(ret * probs, axis=1).reshape(N, H, W, Cch)
    return ret * res_scale + x_nhwc


# ----------------------------------------------------------------------------
# Fuse / Denoiser trunk / UBlock (all NHWC internally)
# ----------------------------------------------------------------------------
def fuse_forward(params, tensors_nhwc):
    cat = jnp.concatenate(tensors_nhwc, axis=-1)
    return conv2d_nhwc(cat, params["conv_w"], params["conv_b"], relu=True)


def denoiser_trunk(params, info_nhwc, key):
    """NLSA + conv2 + conv3 with relu(info + res) fused into the conv3 epilogue."""
    info = nlsa_forward(params["nl"], info_nhwc, key)
    res1 = conv2d_nhwc(info, params["conv2_w"], params["conv2_b"],
                       relu=True, out_dtype=jnp.bfloat16)
    info2 = conv2d_nhwc(res1, params["conv3_w"], params["conv3_b"],
                        add=info, relu=True, out_dtype=jnp.bfloat16)
    return info2


def ublock_forward(params, x, u, ics, key):
    # NCHW -> NHWC once at the block boundary; everything inside stays NHWC.
    to_nhwc = lambda t: jnp.transpose(t, (0, 2, 3, 1))
    to_nchw = lambda t: jnp.transpose(t, (0, 3, 1, 2))
    tensors = [to_nhwc(t) for t in
               (list(ics.x_deque) + list(ics.u_deque)
                + list(ics.r_deque) + list(ics.du_deque))]
    x_h, u_h = to_nhwc(x), to_nhwc(u)
    info0 = fuse_forward(params["fuse"], tensors)
    dp = params["denoiser"]
    info2 = denoiser_trunk(dp, info0, key)
    # conv4 + (du = u + res2) + (u' = u - p1*(u-du) - p2*(x-u)) in one kernel.
    du_h, u_new_h = conv_final_update(info2, dp["conv4_w"], dp["conv4_b"],
                                      u_h, x_h, params["p1"], params["p2"])
    return to_nchw(u_new_h), to_nchw(du_h)


# ----------------------------------------------------------------------------
# Deterministic parameter init
# ----------------------------------------------------------------------------
def init_conv(key, cout, cin, k):
    wkey, bkey = jax.random.split(key)
    fan_in = cin * k * k
    bound = 1.0 / jnp.sqrt(jnp.asarray(fan_in, jnp.float32))
    w = jax.random.uniform(wkey, (cout, cin, k, k), jnp.float32, -bound, bound)
    b = jax.random.uniform(bkey, (cout,), jnp.float32, -bound, bound)
    return w, b


def init_params(key, n_channel, n_information, reduction=4):
    ks = jax.random.split(key, 8)
    fuse_w, fuse_b = init_conv(ks[0], n_channel, n_information, 3)
    match_w, match_b = init_conv(ks[1], n_channel // reduction, n_channel, 3)
    asm_w, asm_b = init_conv(ks[2], n_channel, n_channel, 1)
    c2w, c2b = init_conv(ks[3], n_channel, n_channel, 3)
    c3w, c3b = init_conv(ks[4], n_channel, n_channel, 3)
    c4w, c4b = init_conv(ks[5], 1, n_channel, 3)
    return {
        "fuse": {"conv_w": fuse_w, "conv_b": fuse_b},
        "denoiser": {
            "nl": {"match_w": match_w, "match_b": match_b,
                   "assembly_w": asm_w, "assembly_b": asm_b},
            "conv2_w": c2w, "conv2_b": c2b,
            "conv3_w": c3w, "conv3_b": c3b,
            "conv4_w": c4w, "conv4_b": c4b,
        },
        "p1": jnp.array([0.1], jnp.float32),
        "p2": jnp.array([0.1], jnp.float32),
    }


# ----------------------------------------------------------------------------
if __name__ == "__main__":
    key = jax.random.PRNGKey(0)
    N, H, W = 2, 16, 16
    n_channel = 32        # NonLocalSparseAttention default channels=32
    n_information = 8     # 4 deques x 2 one-channel tensors each

    kp, kx, ku, kd, klsh = jax.random.split(key, 5)
    params = init_params(kp, n_channel, n_information)

    x = jax.random.normal(kx, (N, 1, H, W), jnp.float32)
    u = jax.random.normal(ku, (N, 1, H, W), jnp.float32)

    dks = jax.random.split(kd, 8)
    deq = [jax.random.normal(dks[i], (N, 1, H, W), jnp.float32) for i in range(8)]
    ics = SimpleNamespace(x_deque=deq[0:2], u_deque=deq[2:4],
                          r_deque=deq[4:6], du_deque=deq[6:8])

    u_new, du = ublock_forward(params, x, u, ics, klsh)
    jax.block_until_ready((u_new, du))
    assert u_new.shape == (N, 1, H, W) and du.shape == (N, 1, H, W)
    assert bool(jnp.all(jnp.isfinite(u_new))) and bool(jnp.all(jnp.isfinite(du)))
    print("KERNEL_OK")
</pallas_src>

<mosaic_0001>
module attributes {stable_mosaic.version = 11 : i64} {
  func.func @_conv_kernel(%arg0: i32, %arg1: i32, %arg2: memref<1x1x342x8xbf16, #tpu.memory_space<vmem>>, %arg3: memref<72x32xbf16, #tpu.memory_space<vmem>>, %arg4: memref<1x32xf32, #tpu.memory_space<vmem>>, %arg5: memref<1x1x288x32xf32, #tpu.memory_space<vmem>>) attributes {dimension_semantics = [#tpu.dimension_semantics<parallel>, #tpu.dimension_semantics<parallel>], iteration_bounds = array<i64: 2, 1>, scalar_prefetch = 0 : i64, scratch_operands = 0 : i64, tpu.core_type = #tpu.core_type<tc>, window_params = [{transform_indices = @transform_0, window_bounds = array<i64: 1, 1, 342, 8>}, {pipeline_mode = #tpu.pipeline_mode<synchronous>, transform_indices = @transform_1, window_bounds = array<i64: 72, 32>}, {pipeline_mode = #tpu.pipeline_mode<synchronous>, transform_indices = @transform_2, window_bounds = array<i64: 1, 32>}, {transform_indices = @transform_3, window_bounds = array<i64: 1, 1, 288, 32>}]} {
    %c0 = arith.constant 0 : index
    %c0_0 = arith.constant 0 : index
    %c0_1 = arith.constant 0 : index
    %c0_2 = arith.constant 0 : index
    %0 = vector.load %arg2[%c0, %c0_0, %c0_1, %c0_2] : memref<1x1x342x8xbf16, #tpu.memory_space<vmem>>, vector<1x1x342x8xbf16>
    %1 = vector.shape_cast %0 : vector<1x1x342x8xbf16> to vector<342x8xbf16>
    %2 = vector.extract_strided_slice %1 {offsets = [0, 0], sizes = [288, 8], strides = [1, 1]} : vector<342x8xbf16> to vector<288x8xbf16>
    %3 = vector.extract_strided_slice %1 {offsets = [1, 0], sizes = [288, 8], strides = [1, 1]} : vector<342x8xbf16> to vector<288x8xbf16>
    %4 = vector.extract_strided_slice %1 {offsets = [2, 0], sizes = [288, 8], strides = [1, 1]} : vector<342x8xbf16> to vector<288x8xbf16>
    %5 = vector.extract_strided_slice %1 {offsets = [18, 0], sizes = [288, 8], strides = [1, 1]} : vector<342x8xbf16> to vector<288x8xbf16>
    %6 = vector.extract_strided_slice %1 {offsets = [19, 0], sizes = [288, 8], strides = [1, 1]} : vector<342x8xbf16> to vector<288x8xbf16>
    %7 = vector.extract_strided_slice %1 {offsets = [20, 0], sizes = [288, 8], strides = [1, 1]} : vector<342x8xbf16> to vector<288x8xbf16>
    %8 = vector.extract_strided_slice %1 {offsets = [36, 0], sizes = [288, 8], strides = [1, 1]} : vector<342x8xbf16> to vector<288x8xbf16>
    %9 = vector.extract_strided_slice %1 {offsets = [37, 0], sizes = [288, 8], strides = [1, 1]} : vector<342x8xbf16> to vector<288x8xbf16>
    %10 = vector.extract_strided_slice %1 {offsets = [38, 0], sizes = [288, 8], strides = [1, 1]} : vector<342x8xbf16> to vector<288x8xbf16>
    %11 = tpu.concatenate %2, %3, %4, %5, %6, %7, %8, %9, %10 in 1 : vector<288x8xbf16>, vector<288x8xbf16>, vector<288x8xbf16>, vector<288x8xbf16>, vector<288x8xbf16>, vector<288x8xbf16>, vector<288x8xbf16>, vector<288x8xbf16>, vector<288x8xbf16> -> vector<288x72xbf16>
    %c0_3 = arith.constant 0 : index
    %c0_4 = arith.constant 0 : index
    %12 = vector.load %arg3[%c0_3, %c0_4] : memref<72x32xbf16, #tpu.memory_space<vmem>>, vector<72x32xbf16>
    %cst = arith.constant dense<0.000000e+00> : vector<288x32xf32>
    %13 = tpu.matmul %11, %12, %cst {dimension_numbers = #tpu.dot_dimension_numbers<[1], [0], [0], [1], [0, 0, 1, 1], [], []>} : vector<288x72xbf16>, vector<72x32xbf16>, vector<288x32xf32> -> vector<288x32xf32>
    %c0_5 = arith.constant 0 : index
    %c0_6 = arith.constant 0 : index
    %14 = vector.load %arg4[%c0_5, %c0_6] : memref<1x32xf32, #tpu.memory_space<vmem>>, vector<1x32xf32>
    %15 = vector.broadcast %14 : vector<1x32xf32> to vector<288x32xf32>
    %16 = arith.addf %13, %15 : vector<288x32xf32>
    %cst_7 = arith.constant 0.000000e+00 : f32
    %17 = vector.broadcast %cst_7 : f32 to vector<288x32xf32>
    %18 = arith.maximumf %16, %17 : vector<288x32xf32>
    %c0_8 = arith.constant 0 : index
    %c0_9 = arith.constant 0 : index
    %c0_10 = arith.constant 0 : index
    %c0_11 = arith.constant 0 : index
    %19 = vector.load %arg5[%c0_8, %c0_9, %c0_10, %c0_11] : memref<1x1x288x32xf32, #tpu.memory_space<vmem>>, vector<1x1x288x32xf32>
    %20 = vector.shape_cast %19 : vector<1x1x288x32xf32> to vector<288x32xf32>
    %21 = vector.shape_cast %18 : vector<288x32xf32> to vector<1x1x288x32xf32>
    tpu.vector_store %arg5[%c0_8, %c0_9, %c0_10, %c0_11], %21 {strides = array<i32>} : memref<1x1x288x32xf32, #tpu.memory_space<vmem>>, vector<1x1x288x32xf32>,
    return
  }
  func.func @transform_0(%arg0: i32, %arg1: i32) -> (i32, i32, i32, i32) {
    %c0_i32 = arith.constant 0 : i32
    %c0_i32_0 = arith.constant 0 : i32
    %c0_i32_1 = arith.constant 0 : i32
    return %arg0, %arg1, %c0_i32, %c0_i32_0 : i32, i32, i32, i32
  }
  func.func @transform_1(%arg0: i32, %arg1: i32) -> (i32, i32) {
    %c0_i32 = arith.constant 0 : i32
    %c0_i32_0 = arith.constant 0 : i32
    %c0_i32_1 = arith.constant 0 : i32
    return %c0_i32, %c0_i32_0 : i32, i32
  }
  func.func @transform_2(%arg0: i32, %arg1: i32) -> (i32, i32) {
    %c0_i32 = arith.constant 0 : i32
    %c0_i32_0 = arith.constant 0 : i32
    %c0_i32_1 = arith.constant 0 : i32
    return %c0_i32, %c0_i32_0 : i32, i32
  }
  func.func @transform_3(%arg0: i32, %arg1: i32) -> (i32, i32, i32, i32) {
    %c0_i32 = arith.constant 0 : i32
    %c0_i32_0 = arith.constant 0 : i32
    %c0_i32_1 = arith.constant 0 : i32
    return %arg0, %arg1, %c0_i32, %c0_i32_0 : i32, i32, i32, i32
  }
}

</mosaic_0001>

<bundles_post_ra>
// kernel: tpu_custom_call.1
= control target key start
LH: loop header
LB: loop body
LE: loop exit
PB: predicated region body
PF: predicated region fallthrough
CT: control target
= control target key end

     0   :  { %s2071_s12 = smov 0   ;;  %s2073_s13 = smov 0   ;;  %s3400_s0 = inlined_call_operand.vmem [shape: bf16[2,1,342,8], index: 0, kind: input, shape index: {}]   ;;  %s3401_s1 = inlined_call_operand.vmem [shape: bf16[72,32], index: 1, kind: input, shape index: {}]   ;;  %s3402_s2 = inlined_call_operand.vmem [shape: f32[1,32], index: 2, kind: input, shape index: {}]   ;;  %s3403_s3 = inlined_call_operand.vmem [shape: f32[2,1,288,32], index: 3, kind: output, shape index: {}]  }
   0x1   :  { %s2075_s14 = smov 0  }
   0x2 LB: > { %s25_s15 = sadd.s32 1, %s2037_s13  ;;  %p1810_p0 = scmp.ge.s32.totalorder %s2041_s14, 1  ;;  %s2041_s14 = sphi %s2075_s14, %s13_s14   ;;  %s2037_s13 = sphi %s2073_s13, %s3473_s13   ;;  %s2033_s12 = sphi %s2071_s12, %s3472_s12  }
   0x3   : > { %p27_p1 = scmp.ge.s32.totalorder %s25_s15, 2  ;;  %p157_p2 = scmp.lt.s32.totalorder %s2041_s14, 3 }
   0x5   : > { %s3475_s15 = smov (%p27_p1, %s25_s15), 0  ;;  %p158_p3 = pnand %p1810_p0, %p157_p2 }
   0x7   : > { %161 = sbr.rel (%p158_p3) target bundleno = 627 (0x273), region = 32 }
   0xc   : > { %p189_p4 = scmp.lt.s32.totalorder %s2033_s12, 1  ;;  %vm527_vm0 = vcmask 1046528   ;;  %vm769_vm1 = vcmask 1045504   ;;  %vm342_vm2 = vsmask.f32 7424  ;;  %s2043_s20 = smov 24  }
   0xd   : > { %s2044_s21 = smov 16   ;;  %s2045_s22 = smov 40   ;;  %vm647_vm3 = vsmask.f32 6400  ;;  %vm889_vm4 = vsmask.f32 5376 }
   0xe   : > { %s3477_s12 = smov (!%p189_p4, %s2033_s12), 1  ;;  %s2046_s23 = smov 8   ;;  %vm1011_vm5 = vcmask 1044480   ;;  %vm1461_vm6 = vcmask 1043456   ;;  %vm1085_vm7 = vcmask 64512   ;;  %vm1122_vm8 = vcmask 130048  }
   0xf   : > { %s1943_s16 = smul.u32 172, %s3477_s12  ;;  %s2047_s24 = smov 32   ;;  %vm1159_vm9 = vcmask 195584   ;;  %vm1196_vm10 = vcmask 261120   ;;  %vm1233_vm11 = vcmask 326656   ;;  %vm1270_vm12 = vcmask 392192  }
  0x10   : > { %s2048_s25 = smov 48   ;;  %s2049_s26 = smov 56   ;;  %vm1307_vm13 = vcmask 457728   ;;  %vm1344_vm14 = vcmask 523264   ;;  %vm1424_vm15 = vcmask 588800  }
  0x11   : > { %s2095_s19 = scalar_lea.vmem %s3400_s0, %s1943_s16  ;;  %s2050_s27 = smov 64  }
  0x12   : > { %v2098_v0 = vld [vmem:[%s2095_s19 + $0x8] sm:$0xff]   ;;  %v2101_v1 = vld [vmem:[%s2095_s19 + $0x10] sm:$0xff]   ;;  %v2104_v2 = vld [vmem:[%s2095_s19] sm:$0xff]   ;;  %s1944_s11 = smul.u32 288, %s3477_s12 }
  0x13   : > { %v529_v3 = vrot.slane %v2098_v0, 1  ;;  %v531_v4 = vrot.slane %v2101_v1, 1  ;;  %v770_v5 = vrot.slane %v2098_v0, 2  ;;  %v771_v6 = vrot.slane %v2101_v1, 2  ;;  %v2112_v8 = vld [vmem:[%s2095_s19 + $0x18] sm:$0xff]   ;;  %v2151_v35 = vld [vmem:[%s2095_s19 + $0x20] sm:$0xff]  }
  0x14   : > { %v528_v7 = vrot.slane %v2104_v2, 1  ;;  %v344_v9 = vshrl.u32 %v2104_v2, 16  ;;  %v346_v10 = vshll.u32 %v2104_v2, 16  ;;  %v351_v12 = vshll.u32 %v2098_v0, 16  ;;  %v2174_v48 = vld [vmem:[%s2095_s19 + $0x50] sm:$0xff]   ;;  %v2184_v55 = vld [vmem:[%s2095_s19 + $0x58] sm:$0xff]  }
  0x15   : > { %v532_v11 = vsel %vm527_vm0, %v529_v3, %v531_v4  ;;  %v772_v14 = vsel %vm769_vm1, %v770_v5, %v771_v6  ;;  %v355_v16 = vshrl.u32 %v2098_v0, 16  ;;  %v533_v17 = vrot.slane %v2112_v8, 1 }
  0x16   : > { %611 = vrot.lane.b32.xlu0 %v532_v11, %s2043_s20  ;;  %v530_v13 = vsel %vm527_vm0, %v528_v7, %v529_v3  ;;  %v348_v15 = vrot.slane %v346_v10, 1  ;;  %v353_v18 = vrot.slane %v351_v12, 1  ;;  %v2125_v19 = vshll.u32 %v2101_v1, 16 }
  0x17   : > { %565 = vrot.lane.b32.xlu1 %v530_v13, %s2044_s21  ;;  %v2128_v20 = vshrl.u32 %v2101_v1, 16  ;;  %v2131_v22 = vshll.u32 %v2112_v8, 16  ;;  %v2134_v23 = vshrl.u32 %v2112_v8, 16  ;;  %v648_v29 = vrot.slane %v355_v16, 1 }
  0x18   : > { %v349_v21 = vor.u32 %v348_v15, %v344_v9  ;;  %v361_v24 = vrot.slane %v2125_v19, 1  ;;  %v652_v26 = vrot.slane %v2125_v19, 2  ;;  %v357_v28 = vor.u32 %v355_v16, %v353_v18 }
  0x19   : > { %v651_v25 = vrot.slane %v2128_v20, 1  ;;  %v649_v30 = vrot.slane %v351_v12, 2  ;;  %v2145_v31 = vsel %vm527_vm0, %v531_v4, %v533_v17  ;;  %v773_v32 = vrot.slane %v2112_v8, 2 }
  0x1a   : > { %807 = vrot.lane.b32.xlu0 %v772_v14, %s2045_s22  ;;  %v354_v27 = vsel %vm342_vm2, %v349_v21, %v353_v18  ;;  %v655_v33 = vrot.slane %v2134_v23, 1  ;;  %v656_v34 = vrot.slane %v2131_v22, 2  ;;  %v362_v36 = vsel %vm342_vm2, %v357_v28, %v361_v24 }
  0x1b   : > { %567 = vrot.lane.b32.xlu1 %v532_v11, %s2044_s21  ;;  %v653_v37 = vor.u32 %v652_v26, %v651_v25  ;;  %v650_v38 = vor.u32 %v649_v30, %v648_v29  ;;  %v774_v39 = vsel %vm769_vm1, %v771_v6, %v773_v32  ;;  %v2161_v41 = vshll.u32 %v2151_v35, 16  ;;  %v2214_v6 = vld [vmem:[%s2095_s19 + $0x60] sm:$0xff]   ;;  %v2261_v29 = vld [vmem:[%s2095_s19 + $0x68] sm:$0xff]  }
  0x1c   : > { %v2158_v40 = vor.u32 %v656_v34, %v655_v33  ;;  %v2164_v42 = vshrl.u32 %v2151_v35, 16  ;;  %v893_v43 = vrot.slane %v2134_v23, 2  ;;  %v894_v45 = vrot.slane %v2131_v22, 3  ;;  %3433 = vst [vmem:[#allocation3_spill] sm:$0xff] %v2214_v6  ;;  %v2266_v30 = vld [vmem:[%s2095_s19 + $0x28] sm:$0xff]  }
  0x1d   : > { %v654_v44 = vsel %vm647_vm3, %v650_v38, %v653_v37  ;;  %v890_v46 = vrot.slane %v2128_v20, 2  ;;  %v891_v47 = vrot.slane %v2125_v19, 3  ;;  %v775_v50 = vrot.slane %v2151_v35, 2 }
  0x1e   : > { %491 = vrot.lane.b32.xlu0 %v354_v27, %s2046_s23  ;;  %v658_v49 = vsel %vm647_vm3, %v653_v37, %v2158_v40  ;;  %v897_v51 = vrot.slane %v2164_v42, 2  ;;  %v898_v52 = vrot.slane %v2161_v41, 3  ;;  %v895_v53 = vor.u32 %v894_v45, %v893_v43  ;;  %v1992_v37 = vld [vmem:[%s3401_s1 + $0x18] sm:$0xff]  }
  0x1f   : > { %613 = vrot.lane.b32.xlu1 %v2145_v31, %s2043_s20  ;;  %v892_v54 = vor.u32 %v891_v47, %v890_v46  ;;  %v2187_v56 = vshll.u32 %v2174_v48, 16  ;;  %v2192_v57 = vsel %vm769_vm1, %v773_v32, %v775_v50  ;;  %v1012_v59 = vrot.slane %v2101_v1, 3  ;;  %v1991_v32 = vld [vmem:[%s3401_s1 + $0x20] ss:$0 sps:$4 sm:$0xff]  }
  0x20   : > { %v2194_v58 = vor.u32 %v898_v52, %v897_v51  ;;  %v1013_v60 = vrot.slane %v2112_v8, 3  ;;  %v2204_v63 = vshrl.u32 %v2174_v48, 16  ;;  %v2207_v3 = vshll.u32 %v2184_v55, 16  ;;  %1941 = vmatprep.subr.msk.bf16.mxu0 %vm1461_vm6, %v1991_v32  ;;  %1942 = vmatprep.subr.msk.bf16.mxu1 %vm1461_vm6, %v1991_v32 }
  0x21   : > { %v896_v61 = vsel %vm889_vm4, %v892_v54, %v895_v53  ;;  %v3407_v62 = vrot.slane %v2187_v56, 1  ;;  %v365_v1 = vor.u32 %v2128_v20, %v361_v24  ;;  %v369_v5 = vrot.slane %v2131_v22, 1 }
  0x22   : > { %493 = vrot.lane.b32.xlu0 %v362_v36, %s2046_s23  ;;  %3432 = vst [vmem:[#allocation2_spill] sm:$0xff] %v2207_v3  ;;  %v900_v4 = vsel %vm889_vm4, %v895_v53, %v2194_v58  ;;  %v1014_v7 = vsel %vm1011_vm5, %v1012_v59, %v1013_v60  ;;  %v433_v10 = vrot.slane %v2207_v3, 1  ;;  %v1015_v12 = vrot.slane %v2151_v35, 3  ;;  %v1993_v53 = vld [vmem:[%s3401_s1 + $0x10] sm:$0xff]  }
  0x23   : > { %809 = vrot.lane.b32.xlu1 %v774_v39, %s2045_s22  ;;  %v429_v9 = vor.u32 %v2204_v63, %v3407_v62  ;;  %v370_v11 = vsel %vm342_vm2, %v365_v1, %v369_v5  ;;  %v2226_v13 = vshrl.u32 %v2184_v55, 16  ;;  %v2229_v14 = vshll.u32 %v2214_v6, 16 }
  0x24   : > { %v373_v16 = vor.u32 %v2134_v23, %v369_v5  ;;  %v377_v18 = vrot.slane %v2161_v41, 1  ;;  %v1016_v19 = vsel %vm1011_vm5, %v1013_v60, %v1015_v12  ;;  %v3406_v24 = vrot.slane %v2174_v48, 1 }
  0x25   : > { %3434 = vst [vmem:[#allocation4_spill] sm:$0xff] %v2226_v13  ;;  %v434_v15 = vsel %vm342_vm2, %v429_v9, %v433_v10  ;;  %v437_v20 = vor.u32 %v2226_v13, %v433_v10  ;;  %v441_v21 = vrot.slane %v2229_v14, 1  ;;  %v549_v25 = vrot.slane %v2184_v55, 1  ;;  %v1994_v10 = vld [vmem:[%s3401_s1 + $0x8] sm:$0xff]  }
  0x26   : > { %733 = vrot.lane.b32.xlu0 %v654_v44, %s2047_s24  ;;  %v378_v22 = vsel %vm342_vm2, %v373_v16, %v377_v18  ;;  %v535_v26 = vrot.slane %v2151_v35, 1  ;;  %v551_v28 = vrot.slane %v2214_v6, 1  ;;  %v2278_v36 = vshrl.u32 %v2214_v6, 16 }
  0x27   : > { %735 = vrot.lane.b32.xlu1 %v658_v49, %s2047_s24  ;;  %v442_v23 = vsel %vm342_vm2, %v437_v20, %v441_v21  ;;  %v2257_v27 = vsel %vm527_vm0, %v3406_v24, %v549_v25  ;;  %v537_v38 = vrot.slane %v2266_v30, 1  ;;  %v687_v8 = vrot.slane %v2226_v13, 1  ;;  %v1997_v20 = vld [vmem:[%s3401_s1] sm:$0xff]   ;;  %v2005_v13 = vld [vmem:[%s2095_s19 + $0x10] sm:$0xff]  }
  0x28   : > { %3435 = vst [vmem:[#allocation5_spill] sm:$0xff] %v2257_v27  ;;  %v536_v33 = vsel %vm527_vm0, %v533_v17, %v535_v26  ;;  %v552_v34 = vsel %vm527_vm0, %v549_v25, %v551_v28  ;;  %v688_v17 = vrot.slane %v2207_v3, 2  ;;  %v660_v43 = vrot.slane %v2161_v41, 2 }
  0x29   : > { %v2292_v44 = vshll.u32 %v2266_v30, 16  ;;  %v2295_v45 = vshrl.u32 %v2266_v30, 16  ;;  %v1463_v46 = vsel %vm1461_vm6, %v1991_v32, 0  ;;  %v691_v47 = vrot.slane %v2278_v36, 1 }
  0x2a   : > { %853 = vrot.lane.b32.xlu0 %v774_v39, %s2048_s25  ;;  %v659_v39 = vrot.slane %v2164_v42, 1  ;;  %v692_v49 = vrot.slane %v2229_v14, 2  ;;  %v2300_v51 = vshll.u32 %v2261_v29, 16  ;;  %v2303_v52 = vshrl.u32 %v2261_v29, 16  ;;  %1886 = vmatpush3.bf16.msra.mxu0 %v1463_v46 }
  0x2b   : > { %855 = vrot.lane.b32.xlu1 %v2192_v57, %s2048_s25  ;;  %1936 = vmatpush3.bf16.msra.mxu1 %v1463_v46  ;;  %v2318_v59 = vsel %vm527_vm0, %v535_v26, %v537_v38  ;;  %v2322_v1 = vor.u32 %v688_v17, %v687_v8  ;;  %v791_v25 = vrot.slane %v2214_v6, 2  ;;  %v777_v26 = vrot.slane %v2266_v30, 2 }
  0x2c   : > { %1887 = vmatprep.subr.bf16.mxu0 %v1992_v37  ;;  %1932 = vmatprep.subr.bf16.mxu1 %v1992_v37  ;;  %v661_v60 = vor.u32 %v660_v43, %v659_v39  ;;  %v693_v5 = vor.u32 %v692_v49, %v691_v47  ;;  %v696_v9 = vrot.slane %v2300_v51, 2  ;;  %v793_v32 = vrot.slane %v2261_v29, 2 }
  0x2d   : > { %3436 = vst [vmem:[#allocation6_spill] sm:$0xff] %v2322_v1  ;;  %v930_v43 = vrot.slane %v2229_v14, 3  ;;  %v901_v46 = vrot.slane %v2295_v45, 2  ;;  %v902_v47 = vrot.slane %v2292_v44, 3 }
  0x2e   : > { %975 = vrot.lane.b32.xlu0 %v896_v61, %s2049_s26  ;;  %v663_v61 = vrot.slane %v2295_v45, 1  ;;  %1888 = vmatpush3.bf16.msra.mxu0 %v1992_v37  ;;  %v694_v16 = vsel %vm647_vm3, %v2322_v1, %v693_v5  ;;  %v794_v8 = vsel %vm769_vm1, %v791_v25, %v793_v32 }
  0x2f   : > { %977 = vrot.lane.b32.xlu1 %v900_v4, %s2049_s26  ;;  %v664_v4 = vrot.slane %v2292_v44, 2  ;;  %1937 = vmatpush3.bf16.msra.mxu1 %v1992_v37  ;;  %v778_v37 = vsel %vm769_vm1, %v775_v50, %v777_v26 }
  0x30   : > { %1889 = vmatprep.subr.bf16.mxu0 %v1993_v53  ;;  %1933 = vmatprep.subr.bf16.mxu1 %v1993_v53 }
  0x32   : > { %1049 = vrot.lane.b32.xlu0 %v1014_v7, %s2050_s27  ;;  %v695_v7 = vrot.slane %v2303_v52, 1  ;;  %1890 = vmatpush3.bf16.msra.mxu0 %v1993_v53 }
  0x33   : > { %495 = vrot.lane.b32.xlu1 %v370_v11, %s2046_s23  ;;  %v662_v11 = vsel %vm647_vm3, %v2158_v40, %v661_v60  ;;  %1938 = vmatpush3.bf16.msra.mxu1 %v1993_v53  ;;  %v933_v53 = vrot.slane %v2303_v52, 2 }
  0x34   : > { %1891 = vmatprep.subr.bf16.mxu0 %v1994_v10  ;;  %1934 = vmatprep.subr.bf16.mxu1 %v1994_v10 }
  0x36   : > { %511 = vrot.lane.b32.xlu0 %v434_v15, %s2046_s23  ;;  %v2335_v15 = vor.u32 %v664_v4, %v663_v61  ;;  %1892 = vmatpush3.bf16.msra.mxu0 %v1994_v10 }
  0x37   : > { %1051 = vrot.lane.b32.xlu1 %v1016_v19, %s2050_s27  ;;  %v2339_v19 = vor.u32 %v696_v9, %v695_v7  ;;  %1893 = vmatprep.subr.bf16.mxu0 %v1997_v20  ;;  %v903_v9 = vor.u32 %v902_v47, %v901_v46  ;;  %v1033_v46 = vrot.slane %v2261_v29, 3 }
  0x38   : > { %v666_v40 = vsel %vm647_vm3, %v661_v60, %v2335_v15  ;;  %1939 = vmatpush3.bf16.msra.mxu1 %v1994_v10  ;;  %v934_v60 = vrot.slane %v2300_v51, 3 }
  0x39   : > { %1935 = vmatprep.subr.bf16.mxu1 %v1997_v20 }
  0x3a   : > { %497 = vrot.lane.b32.xlu0 %v378_v22, %s2046_s23  ;;  %v698_v22 = vsel %vm647_vm3, %v693_v5, %v2339_v19  ;;  %1894 = vmatpush3.bf16.msra.mxu0 %v1997_v20 }
  0x3b   : > { %513 = vrot.lane.b32.xlu1 %v442_v23, %s2046_s23  ;;  %v3405_v23 = vrot.slane %v2184_v55, 2 }
  0x3c   : > { %1940 = vmatpush3.bf16.msra.mxu1 %v1997_v20  ;;  %v935_v20 = vor.u32 %v934_v60, %v933_v53  ;;  %v381_v53 = vor.u32 %v2164_v42, %v377_v18  ;;  %v385_v60 = vrot.slane %v2292_v44, 1 }
  0x3e   : > { %569 = vrot.lane.b32.xlu0 %v2145_v31, %s2044_s21  ;;  %v553_v31 = vrot.slane %v2261_v29, 1  ;;  %v386_v35 = vsel %vm342_vm2, %v381_v53, %v385_v60  ;;  %v389_v18 = vor.u32 %v2295_v45, %v385_v60 }
  0x3f   : > { %585 = vrot.lane.b32.xlu1 %v2257_v27, %s2044_s21 }
  0x40   : > { %v2312_v54 = vsel %vm527_vm0, %v551_v28, %v553_v31  ;;  %v2358_v28 = vsel %vm769_vm1, %v3405_v23, %v791_v25  ;;  %v904_v25 = vsel %vm889_vm4, %v2194_v58, %v903_v9  ;;  %v3404_v58 = vrot.slane %v2214_v6, 3 }
  0x41   : > { %3437 = vst [vmem:[#allocation7_spill] sm:$0xff] %v2358_v28 }
  0x42   : > { %571 = vrot.lane.b32.xlu0 %v536_v33, %s2044_s21 }
  0x43   : > { %587 = vrot.lane.b32.xlu1 %v552_v34, %s2044_s21 }
  0x46   : > { %615 = vrot.lane.b32.xlu0 %v536_v33, %s2043_s20  ;;  %v2364_v33 = vld [vmem:[%s2095_s19 + $0x70] sm:$0xff]  }
  0x47   : > { %631 = vrot.lane.b32.xlu1 %v552_v34, %s2043_s20  ;;  %v2367_v34 = vld [vmem:[%s2095_s19 + $0x30] sm:$0xff]   ;;  %v795_v17 = vrot.slane %v2364_v33, 2  ;;  %v2392_v61 = vshll.u32 %v2364_v33, 16  ;;  %v2395_v4 = vshrl.u32 %v2364_v33, 16 }
  0x48   : > { %v779_v39 = vrot.slane %v2367_v34, 2  ;;  %v2384_v50 = vshll.u32 %v2367_v34, 16  ;;  %v2387_v49 = vshrl.u32 %v2367_v34, 16  ;;  %v1019_v41 = vrot.slane %v2367_v34, 3 }
  0x49   : > { %v2401_v5 = vsel %vm769_vm1, %v793_v32, %v795_v17  ;;  %v699_v29 = vrot.slane %v2395_v4, 1 }
  0x4a   : > { %617 = vrot.lane.b32.xlu0 %v2318_v59, %s2043_s20  ;;  %v2407_v7 = vsel %vm769_vm1, %v777_v26, %v779_v39  ;;  %v905_v10 = vrot.slane %v2387_v49, 2 }
  0x4b   : > { %633 = vrot.lane.b32.xlu1 %v2312_v54, %s2043_s20 }
  0x4e   : > { %737 = vrot.lane.b32.xlu0 %v662_v11, %s2047_s24  ;;  %v906_v11 = vrot.slane %v2384_v50, 3 }
  0x4f   : > { %753 = vrot.lane.b32.xlu1 %v694_v16, %s2047_s24 }
  0x50   : > { %v2421_v26 = vor.u32 %v906_v11, %v905_v10  ;;  %v445_v10 = vor.u32 %v2278_v36, %v441_v21  ;;  %v449_v11 = vrot.slane %v2300_v51, 1  ;;  %v3412_v21 = vrot.slane %v2384_v50, 1 }
  0x51   : > { %v3410_v51 = vrot.slane %v2392_v61, 1 }
  0x52   : > { %739 = vrot.lane.b32.xlu0 %v666_v40, %s2047_s24  ;;  %v937_v40 = vrot.slane %v2395_v4, 2  ;;  %v450_v42 = vsel %vm342_vm2, %v445_v10, %v449_v11  ;;  %v453_v44 = vor.u32 %v2303_v52, %v449_v11  ;;  %v539_v52 = vrot.slane %v2367_v34, 1 }
  0x53   : > { %755 = vrot.lane.b32.xlu1 %v698_v22, %s2047_s24  ;;  %v938_v22 = vrot.slane %v2392_v61, 3 }
  0x54   : > { %v458_v45 = vsel %vm342_vm2, %v453_v44, %v3410_v51 }
  0x56   : > { %811 = vrot.lane.b32.xlu0 %v2192_v57, %s2045_s22  ;;  %v929_v57 = vrot.slane %v2278_v36, 2 }
  0x57   : > { %827 = vrot.lane.b32.xlu1 %v2358_v28, %s2045_s22 }
  0x58   : > { %v2411_v16 = vor.u32 %v930_v43, %v929_v57  ;;  %v1017_v57 = vrot.slane %v2266_v30, 3 }
  0x5a   : > { %813 = vrot.lane.b32.xlu0 %v778_v37, %s2045_s22  ;;  %3438 = vst [vmem:[#allocation8_spill] sm:$0xff] %v2411_v16  ;;  %v936_v32 = vsel %vm889_vm4, %v2411_v16, %v935_v20  ;;  %v1018_v47 = vsel %vm1011_vm5, %v1015_v12, %v1017_v57  ;;  %v3411_v12 = vrot.slane %v2364_v33, 3  ;;  %v1020_v14 = vsel %vm1011_vm5, %v1017_v57, %v1019_v41 }
  0x5b   : > { %829 = vrot.lane.b32.xlu1 %v794_v8, %s2045_s22 }
  0x5c   : > { %v1036_v36 = vsel %vm1011_vm5, %v1033_v46, %v3411_v12 }
  0x5e   : > { %857 = vrot.lane.b32.xlu0 %v778_v37, %s2048_s25  ;;  %v2425_v37 = vor.u32 %v938_v22, %v937_v40  ;;  %v555_v40 = vrot.slane %v2364_v33, 1  ;;  %v2485_v22 = vld [vmem:[%s2095_s19 + $0x78] sm:$0xff]  }
  0x5f   : > { %873 = vrot.lane.b32.xlu1 %v794_v8, %s2048_s25  ;;  %v908_v8 = vsel %vm889_vm4, %v903_v9, %v2421_v26  ;;  %v1034_v9 = vsel %vm1011_vm5, %v3404_v58, %v1033_v46  ;;  %v3408_v57 = vrot.slane %v2485_v22, 1  ;;  %v2513_v46 = vshll.u32 %v2485_v22, 16 }
  0x60   : > { %v940_v43 = vsel %vm889_vm4, %v935_v20, %v2425_v37  ;;  %v394_v20 = vsel %vm342_vm2, %v389_v18, %v3412_v21 }
  0x61   : > { %v704_v18 = vrot.slane %v2513_v46, 2  ;;  %v942_v24 = vrot.slane %v2513_v46, 3  ;;  %v465_v34 = vrot.slane %v2513_v46, 1 }
  0x62   : > { %859 = vrot.lane.b32.xlu0 %v2407_v7, %s2048_s25 }
  0x63   : > { %875 = vrot.lane.b32.xlu1 %v2401_v5, %s2048_s25 }
  0x66   : > { %979 = vrot.lane.b32.xlu0 %v904_v25, %s2049_s26  ;;  %v2488_v25 = vld [vmem:[%s2095_s19 + $0x38] sm:$0xff]  }
  0x67   : > { %995 = vrot.lane.b32.xlu1 %v936_v32, %s2049_s26  ;;  %v540_v32 = vsel %vm527_vm0, %v537_v38, %v539_v52  ;;  %v2505_v30 = vshll.u32 %v2488_v25, 16  ;;  %v2508_v38 = vshrl.u32 %v2488_v25, 16 }
  0x69   : > { %v672_v10 = vrot.slane %v2505_v30, 2 }
  0x6a   : > { %981 = vrot.lane.b32.xlu0 %v908_v8, %s2049_s26  ;;  %v556_v8 = vsel %vm527_vm0, %v553_v31, %v555_v40  ;;  %v700_v31 = vrot.slane %v2392_v61, 2 }
  0x6b   : > { %997 = vrot.lane.b32.xlu1 %v940_v43, %s2049_s26  ;;  %v667_v43 = vrot.slane %v2387_v49, 1 }
  0x6e   : > { %1053 = vrot.lane.b32.xlu0 %v1018_v47, %s2050_s27  ;;  %v2516_v47 = vshrl.u32 %v2485_v22, 16 }
  0x6f   : > { %1069 = vrot.lane.b32.xlu1 %v1034_v9, %s2050_s27  ;;  %v671_v9 = vrot.slane %v2508_v38, 1 }
  0x70   : > { %v941_v23 = vrot.slane %v2516_v47, 2 }
  0x72   : > { %499 = vrot.lane.b32.xlu0 %v386_v35, %s2046_s23  ;;  %v2530_v35 = vsel %vm527_vm0, %v555_v40, %v3408_v57 }
  0x73   : > { %515 = vrot.lane.b32.xlu1 %v450_v42, %s2046_s23  ;;  %v701_v42 = vor.u32 %v700_v31, %v699_v29  ;;  %v797_v31 = vrot.slane %v2485_v22, 2 }
  0x76   : > { %1055 = vrot.lane.b32.xlu0 %v1020_v14, %s2050_s27  ;;  %v703_v14 = vrot.slane %v2516_v47, 1 }
  0x77   : > { %1071 = vrot.lane.b32.xlu1 %v1036_v36, %s2050_s27 }
  0x78   : > { %v2546_v40 = vor.u32 %v704_v18, %v703_v14 }
  0x7a   : > { %501 = vrot.lane.b32.xlu0 %v394_v20, %s2046_s23  ;;  %v2540_v20 = vor.u32 %v672_v10, %v671_v9  ;;  %v2566_v10 = vld [vmem:[%s2095_s19 + $0x40] sm:$0xff]  }
  0x7b   : > { %517 = vrot.lane.b32.xlu1 %v458_v45, %s2046_s23 }
  0x7e   : > { %573 = vrot.lane.b32.xlu0 %v2318_v59, %s2044_s21  ;;  %v3409_v59 = vrot.slane %v2488_v25, 1 }
  0x7f   : > { %589 = vrot.lane.b32.xlu1 %v2312_v54, %s2044_s21  ;;  %v668_v54 = vrot.slane %v2384_v50, 2 }
  0x80   : > { %v2523_v53 = vsel %vm527_vm0, %v539_v52, %v3409_v59  ;;  %v702_v52 = vsel %vm647_vm3, %v2339_v19, %v701_v42  ;;  %v781_v19 = vrot.slane %v2488_v25, 2 }
  0x81   : > { %v669_v60 = vor.u32 %v668_v54, %v667_v43  ;;  %v706_v43 = vsel %vm647_vm3, %v701_v42, %v2546_v40 }
  0x82   : > { %575 = vrot.lane.b32.xlu0 %v540_v32, %s2044_s21  ;;  %v782_v42 = vsel %vm769_vm1, %v779_v39, %v781_v19  ;;  %v909_v39 = vrot.slane %v2508_v38, 2 }
  0x83   : > { %591 = vrot.lane.b32.xlu1 %v556_v8, %s2044_s21  ;;  %v670_v44 = vsel %vm647_vm3, %v2335_v15, %v669_v60 }
  0x86   : > { %619 = vrot.lane.b32.xlu0 %v540_v32, %s2043_s20 }
  0x87   : > { %635 = vrot.lane.b32.xlu1 %v556_v8, %s2043_s20  ;;  %v674_v8 = vsel %vm647_vm3, %v669_v60, %v2540_v20  ;;  %v2563_v60 = vld [vmem:[%s2095_s19 + $0x80] sm:$0xff]  }
  0x88   : > { %v612_v11 = vpop.permute.xlu0 %611  ;;  %v2596_v62 = vshll.u32 %v2563_v60, 16  ;;  %v3449_v6 = vrot.slane %v2563_v60, 2 }
  0x89   : > { %v566_v36 = vpop.permute.xlu1 %565 }
  0x8a   : > { %621 = vrot.lane.b32.xlu0 %v2523_v53, %s2043_s20 }
  0x8b   : > { %637 = vrot.lane.b32.xlu1 %v2530_v35, %s2043_s20 }
  0x8c   : > { %v2542_v45 = vpop.permute.xlu0 %807 }
  0x8d   : > { %v568_v32 = vpop.permute.xlu1 %567 }
  0x8e   : > { %741 = vrot.lane.b32.xlu0 %v670_v44, %s2047_s24 }
  0x8f   : > { %757 = vrot.lane.b32.xlu1 %v702_v52, %s2047_s24  ;;  %v3419_v52 = vrot.slane %v2566_v10, 2 }
  0x90   : > { %v492_v15 = vpop.permute.xlu0 %491 }
  0x91   : > { %v614_v54 = vpop.permute.xlu1 %613  ;;  %v1087_v14 = vsel %vm1085_vm7, %v2104_v2, %v492_v15  ;;  %v2607_v57 = vsel %vm769_vm1, %v781_v19, %v3419_v52  ;;  %v946_v19 = vrot.slane %v2596_v62, 3 }
  0x92   : > { %743 = vrot.lane.b32.xlu0 %v674_v8, %s2047_s24  ;;  %v910_v8 = vrot.slane %v2505_v30, 3  ;;  %v1124_v2 = vsel %vm1122_vm8, %v1087_v14, %v566_v36  ;;  %v2599_v36 = vshrl.u32 %v2563_v60, 16 }
  0x93   : > { %759 = vrot.lane.b32.xlu1 %v706_v43, %s2047_s24  ;;  %v2591_v43 = vshrl.u32 %v2566_v10, 16  ;;  %v1161_v14 = vsel %vm1159_vm9, %v1124_v2, %v612_v11 }
  0x94   : > { %v494_v29 = vpop.permute.xlu0 %493  ;;  %v911_v51 = vor.u32 %v910_v8, %v909_v39  ;;  %v945_v2 = vrot.slane %v2599_v36, 2 }
  0x95   : > { %v2558_v9 = vpop.permute.xlu1 %809  ;;  %v1089_v15 = vsel %vm1085_vm7, %v2098_v0, %v494_v29  ;;  %v913_v12 = vrot.slane %v2591_v43, 2 }
  0x96   : > { %815 = vrot.lane.b32.xlu0 %v2407_v7, %s2045_s22  ;;  %v798_v7 = vsel %vm769_vm1, %v795_v17, %v797_v31  ;;  %v2588_v17 = vshll.u32 %v2566_v10, 16  ;;  %v1126_v29 = vsel %vm1122_vm8, %v1089_v15, %v568_v32  ;;  %v2636_v15 = vor.u32 %v946_v19, %v945_v2 }
  0x97   : > { %831 = vrot.lane.b32.xlu1 %v2401_v5, %s2045_s22  ;;  %v3417_v5 = vrot.slane %v2563_v60, 2 }
  0x98   : > { %v734_v18 = vpop.permute.xlu0 %733  ;;  %v914_v21 = vrot.slane %v2588_v17, 3 }
  0x99   : > { %v736_v44 = vpop.permute.xlu1 %735  ;;  %v1198_v59 = vsel %vm1196_vm10, %v1161_v14, %v734_v18  ;;  %v2616_v11 = vsel %vm769_vm1, %v797_v31, %v3417_v5  ;;  %v1163_v18 = vsel %vm1159_vm9, %v1126_v29, %v614_v54 }
  0x9a   : > { %817 = vrot.lane.b32.xlu0 %v782_v42, %s2045_s22  ;;  %v1235_v39 = vsel %vm1233_vm11, %v1198_v59, %v2542_v45  ;;  %v1200_v54 = vsel %vm1196_vm10, %v1163_v18, %v736_v44  ;;  %v401_v18 = vrot.slane %v2505_v30, 1 }
  0x9b   : > { %833 = vrot.lane.b32.xlu1 %v798_v7, %s2045_s22 }
  0x9c   : > { %v854_v58 = vpop.permute.xlu0 %853  ;;  %v405_v46 = vor.u32 %v2508_v38, %v401_v18 }
  0x9d   : > { %v856_v0 = vpop.permute.xlu1 %855  ;;  %v1272_v8 = vsel %vm1270_vm12, %v1235_v39, %v854_v58  ;;  %v3440_v39 = vrot.slane %v2364_v33, 3 }
  0x9e   : > { %861 = vrot.lane.b32.xlu0 %v782_v42, %s2048_s25  ;;  %v943_v42 = vor.u32 %v942_v24, %v941_v23  ;;  %v912_v24 = vsel %vm889_vm4, %v2421_v26, %v911_v51  ;;  %v2630_v23 = vor.u32 %v914_v21, %v913_v12  ;;  %v1237_v26 = vsel %vm1233_vm11, %v1200_v54, %v2558_v9 }
  0x9f   : > { %877 = vrot.lane.b32.xlu1 %v798_v7, %s2048_s25  ;;  %v1274_v21 = vsel %vm1270_vm12, %v1237_v26, %v856_v0  ;;  %v3439_v0 = vrot.slane %v2384_v50, 1  ;;  %v469_v26 = vor.u32 %v2516_v47, %v465_v34 }
  0xa0   : > { %v976_v32 = vpop.permute.xlu0 %975  ;;  %v944_v45 = vsel %vm889_vm4, %v2425_v37, %v943_v42  ;;  %v916_v12 = vsel %vm889_vm4, %v911_v51, %v2630_v23  ;;  %v1021_v37 = vrot.slane %v2488_v25, 3  ;;  %v948_v14 = vsel %vm889_vm4, %v943_v42, %v2636_v15 }
  0xa1   : > { %v978_v7 = vpop.permute.xlu1 %977  ;;  %v1309_v31 = vsel %vm1307_vm13, %v1272_v8, %v976_v32  ;;  %v1037_v32 = vrot.slane %v2485_v22, 3  ;;  %v397_v42 = vor.u32 %v2387_v49, %v3439_v0  ;;  %v3416_v49 = vrot.slane %v2566_v10, 3  ;;  %v2730_v0 = vld [vmem:[%s2095_s19 + $0x48] sm:$0xff]  }
  0xa2   : > { %863 = vrot.lane.b32.xlu0 %v2607_v57, %s2048_s25  ;;  %v1311_v2 = vsel %vm1307_vm13, %v1274_v21, %v978_v7  ;;  %v1022_v51 = vsel %vm1011_vm5, %v1019_v41, %v1021_v37 }
  0xa3   : > { %879 = vrot.lane.b32.xlu1 %v2616_v11, %s2048_s25  ;;  %v1038_v8 = vsel %vm1011_vm5, %v3440_v39, %v1037_v32  ;;  %v402_v50 = vsel %vm342_vm2, %v397_v42, %v401_v18  ;;  %v3442_v42 = vrot.slane %v2488_v25, 1  ;;  %v675_v25 = vrot.slane %v2591_v43, 1 }
  0xa4   : > { %v1050_v59 = vpop.permute.xlu0 %1049 }
  0xa5   : > { %v2638_v58 = vpop.permute.xlu1 %495  ;;  %v1346_v29 = vsel %vm1344_vm14, %v1309_v31, %v1050_v59  ;;  %v3415_v59 = vrot.slane %v2588_v17, 1 }
  0xa6   : > { %983 = vrot.lane.b32.xlu0 %v912_v24, %s2049_s26  ;;  %1895 = vmatprep.mubr.msk.bf16.mxu0 %vm1424_vm15, %v1346_v29  ;;  %v3441_v24 = vrot.slane %v2392_v61, 1  ;;  %v3414_v61 = vrot.slane %v2563_v60, 3 }
  0xa7   : > { %999 = vrot.lane.b32.xlu1 %v944_v45, %s2049_s26  ;;  %v410_v38 = vsel %vm342_vm2, %v405_v46, %v3415_v59  ;;  %v708_v46 = vrot.slane %v2596_v62, 2 }
  0xa8   : > { %v2650_v44 = vpop.permute.xlu0 %511  ;;  %v461_v54 = vor.u32 %v2395_v4, %v3441_v24  ;;  %v1024_v4 = vsel %vm1011_vm5, %v1021_v37, %v3416_v49  ;;  %v1040_v29 = vsel %vm1011_vm5, %v1037_v32, %v3414_v61  ;;  %v543_v32 = vrot.slane %v2566_v10, 1 }
  0xa9   : > { %v1052_v19 = vpop.permute.xlu1 %1051 }
  0xaa   : > { %v1348_v9 = vsel %vm1344_vm14, %v1311_v2, %v1052_v19  ;;  %985 = vrot.lane.b32.xlu0 %v916_v12, %s2049_s26  ;;  %v466_v33 = vsel %vm342_vm2, %v461_v54, %v465_v34  ;;  %v3413_v12 = vrot.slane %v2596_v62, 1  ;;  %v559_v19 = vrot.slane %v2563_v60, 1 }
  0xab   : > { %1001 = vrot.lane.b32.xlu1 %v948_v14, %s2049_s26  ;;  %1896 = vmatmul.mubr.msk.bf16.vlgmr.msra.gmra.mxu0 %vm1424_vm15, %v1348_v9  ;;  %v544_v18 = vsel %vm527_vm0, %v3442_v42, %v543_v32  ;;  %v3418_v34 = vrot.slane %v2730_v0, 1 }
  0xac   : > { %v2667_v7 = vpop.permute.xlu0 %497  ;;  %v474_v47 = vsel %vm342_vm2, %v469_v26, %v3413_v12 }
  0xad   : > { %v2676_v31 = vpop.permute.xlu1 %513 }
  0xae   : > { %1057 = vrot.lane.b32.xlu0 %v1022_v51, %s2050_s27  ;;  %v2727_v51 = vld [vmem:[%s2095_s19 + $0x88] sm:$0xff]  }
  0xaf   : > { %1073 = vrot.lane.b32.xlu1 %v1038_v8, %s2050_s27  ;;  %v3443_v8 = vrot.slane %v2485_v22, 1  ;;  %v2756_v22 = vshrl.u32 %v2730_v0, 16  ;;  %v2766_v26 = vshrl.u32 %v2727_v51, 16 }
  0xb0   : > { %v2682_v41 = vpop.permute.xlu0 %569 }
  0xb1   : > { %v2686_v30 = vpop.permute.xlu1 %585  ;;  %v560_v24 = vsel %vm527_vm0, %v3443_v8, %v559_v19  ;;  %v679_v8 = vrot.slane %v2756_v22, 1  ;;  %v917_v1 = vrot.slane %v2756_v22, 2 }
  0xb2   : > { %503 = vrot.lane.b32.xlu0 %v402_v50, %s2046_s23  ;;  %v2753_v50 = vshll.u32 %v2730_v0, 16 }
  0xb3   : > { %519 = vrot.lane.b32.xlu1 %v466_v33, %s2046_s23 }
  0xb4   : > { %v2695_v45 = vpop.permute.xlu0 %571  ;;  %v680_v12 = vrot.slane %v2753_v50, 2 }
  0xb5   : > { %v2702_v21 = vpop.permute.xlu1 %587 }
  0xb6   : > { %1059 = vrot.lane.b32.xlu0 %v1024_v4, %s2050_s27  ;;  %v707_v4 = vrot.slane %v2599_v36, 1 }
  0xb7   : > { %1075 = vrot.lane.b32.xlu1 %v1040_v29, %s2050_s27  ;;  %v2763_v29 = vshll.u32 %v2727_v51, 16 }
  0xb8   : > { %v2709_v37 = vpop.permute.xlu0 %615  ;;  %v709_v49 = vor.u32 %v708_v46, %v707_v4 }
  0xb9   : > { %v2714_v14 = vpop.permute.xlu1 %631 }
  0xba   : > { %505 = vrot.lane.b32.xlu0 %v410_v38, %s2046_s23 }
  0xbb   : > { %521 = vrot.lane.b32.xlu1 %v474_v47, %s2046_s23  ;;  %v2775_v47 = vsel %vm527_vm0, %v543_v32, %v3418_v34 }
  0xbc   : > { %v2719_v2 = vpop.permute.xlu0 %617 }
  0xbd   : > { %v2722_v9 = vpop.permute.xlu1 %633 }
  0xbe   : > { %577 = vrot.lane.b32.xlu0 %v2523_v53, %s2044_s21  ;;  %v2746_v53 = vrot.slane %v2727_v51, 1 }
  0xbf   : > { %593 = vrot.lane.b32.xlu1 %v2530_v35, %s2044_s21  ;;  %v676_v35 = vrot.slane %v2588_v17, 2 }
  0xc0   : > { %v2737_v39 = vpop.permute.xlu0 %737  ;;  %3444 = vst [vmem:[#allocation9_spill] sm:$0xff] %v2746_v53  ;;  %v2781_v59 = vsel %vm527_vm0, %v559_v19, %v2746_v53 }
  0xc1   : > { %v2742_v54 = vpop.permute.xlu1 %753  ;;  %v677_v42 = vor.u32 %v676_v35, %v675_v25  ;;  %3445 = vst [vmem:[#allocation10_spill] sm:$0xff] %v2781_v59  ;;  %v2791_v25 = vor.u32 %v680_v12, %v679_v8  ;;  %v710_v35 = vsel %vm647_vm3, %v2546_v40, %v709_v49  ;;  %v2809_v8 = vld [vmem:[%s2095_s19 + $0x90] sm:$0xf]  ;;  %v245_v40 = vld [vmem:[%s2095_s19 + $0x94] sm:$0xf] }
  0xc2   : > { %579 = vrot.lane.b32.xlu0 %v544_v18, %s2044_s21 }
  0xc3   : > { %595 = vrot.lane.b32.xlu1 %v560_v24, %s2044_s21  ;;  %v678_v32 = vsel %vm647_vm3, %v2540_v20, %v677_v42  ;;  %3446 = vst [vmem:[#allocation11_spill] sm:$0xff] %v2791_v25  ;;  %v682_v34 = vsel %vm647_vm3, %v677_v42, %v2791_v25 }
  0xc4   : > { %v2758_v33 = vpop.permute.xlu0 %739 }
  0xc5   : > { %v2768_v38 = vpop.permute.xlu1 %755 }
  0xc6   : > { %623 = vrot.lane.b32.xlu0 %v544_v18, %s2043_s20  ;;  %v711_v18 = vrot.slane %v2766_v26, 1 }
  0xc7   : > { %639 = vrot.lane.b32.xlu1 %v560_v24, %s2043_s20  ;;  %v712_v24 = vrot.slane %v2763_v29, 2 }
  0xc8   : > { %v812_v61 = vpop.permute.xlu0 %811 }
  0xc9   : > { %v828_v5 = vpop.permute.xlu1 %827  ;;  %v2797_v4 = vor.u32 %v712_v24, %v711_v18  ;;  %v785_v18 = vrot.slane %v2730_v0, 2 }
  0xca   : > { %625 = vrot.lane.b32.xlu0 %v2775_v47, %s2043_s20 }
  0xcb   : > { %641 = vrot.lane.b32.xlu1 %v2781_v59, %s2043_s20  ;;  %3447 = vst [vmem:[#allocation12_spill] sm:$0xff] %v2797_v4  ;;  %v714_v20 = vsel %vm647_vm3, %v709_v49, %v2797_v4  ;;  %v3448_v49 = vrot.slane %v2566_v10, 2  ;;  %v1107_v4 = vsel %vm1085_vm7, %v2174_v48, %v2650_v44 }
  0xcc   : > { %v2793_v19 = vpop.permute.xlu0 %813 }
  0xcd   : > { %v2799_v46 = vpop.permute.xlu1 %829 }
  0xce   : > { %745 = vrot.lane.b32.xlu0 %v678_v32, %s2047_s24  ;;  %v801_v32 = vrot.slane %v2727_v51, 2 }
  0xcf   : > { %761 = vrot.lane.b32.xlu1 %v710_v35, %s2047_s24  ;;  %v2820_v35 = vcombine.low %v2809_v8, %v245_v40 }
  0xd0   : > { %v858_v52 = vpop.permute.xlu0 %857  ;;  %v802_v16 = vsel %vm769_vm1, %v3449_v6, %v801_v32  ;;  %v918_v6 = vrot.slane %v2753_v50, 3 }
  0xd1   : > { %v874_v12 = vpop.permute.xlu1 %873  ;;  %v2833_v3 = vrot.slane %v2820_v35, 2  ;;  %v716_v27 = vshrl.u32 %v2820_v35, 16  ;;  %v719_v53 = vshll.u32 %v2820_v35, 16 }
  0xd2   : > { %747 = vrot.lane.b32.xlu0 %v682_v34, %s2047_s24  ;;  %v786_v34 = vsel %vm769_vm1, %v3448_v49, %v785_v18  ;;  %v950_v49 = vrot.slane %v2763_v29, 3 }
  0xd3   : > { %763 = vrot.lane.b32.xlu1 %v714_v20, %s2047_s24 }
  0xd4   : > { %v2814_v24 = vpop.permute.xlu0 %859 }
  0xd5   : > { %v2817_v42 = vpop.permute.xlu1 %875 }
  0xd6   : > { %819 = vrot.lane.b32.xlu0 %v2607_v57, %s2045_s22  ;;  %v949_v57 = vrot.slane %v2766_v26, 2 }
  0xd7   : > { %835 = vrot.lane.b32.xlu1 %v2616_v11, %s2045_s22  ;;  %v1091_v11 = vsel %vm1085_vm7, %v2005_v13, %v2638_v58  ;;  %v1144_v13 = vsel %vm1122_vm8, %v1107_v4, %v2686_v30  ;;  %v3450_v30 = vrot.slane %v2174_v48, 2 }
  0xd8   : > { %v980_v20 = vpop.permute.xlu0 %979  ;;  %v1128_v40 = vsel %vm1122_vm8, %v1091_v11, %v2682_v41  ;;  %v1181_v59 = vsel %vm1159_vm9, %v1144_v13, %v2714_v14  ;;  %v2862_v11 = vsel %vm769_vm1, %v801_v32, %v2833_v3  ;;  %v951_v14 = vor.u32 %v950_v49, %v949_v57 }
  0xd9   : > { %v996_v28 = vpop.permute.xlu1 %995  ;;  %v1165_v58 = vsel %vm1159_vm9, %v1128_v40, %v2709_v37  ;;  %v2867_v37 = vsel %vm769_vm1, %v785_v18, %v3450_v30  ;;  %v1218_v4 = vsel %vm1196_vm10, %v1181_v59, %v2742_v54  ;;  %v922_v18 = vrot.slane %v2187_v56, 3 }
  0xda   : > { %821 = vrot.lane.b32.xlu0 %v786_v34, %s2045_s22  ;;  %v1202_v44 = vsel %vm1196_vm10, %v1165_v58, %v2737_v39  ;;  %v919_v39 = vor.u32 %v918_v6, %v917_v1  ;;  %v1255_v13 = vsel %vm1233_vm11, %v1218_v4, %v828_v5  ;;  %v921_v58 = vrot.slane %v2204_v63, 2 }
  0xdb   : > { %837 = vrot.lane.b32.xlu1 %v802_v16, %s2045_s22  ;;  %v1239_v40 = vsel %vm1233_vm11, %v1202_v44, %v812_v61  ;;  %v1292_v30 = vsel %vm1270_vm12, %v1255_v13, %v874_v12  ;;  %v953_v54 = vrot.slane %v716_v27, 2  ;;  %v954_v1 = vrot.slane %v719_v53, 3 }
  0xdc   : > { %v982_v25 = vpop.permute.xlu0 %981  ;;  %v1276_v32 = vsel %vm1270_vm12, %v1239_v40, %v858_v52  ;;  %v1329_v5 = vsel %vm1307_vm13, %v1292_v30, %v996_v28  ;;  %v1109_v28 = vsel %vm1085_vm7, %v2184_v55, %v2676_v31  ;;  %v952_v31 = vsel %vm889_vm4, %v2636_v15, %v951_v14 }
  0xdd   : > { %v998_v41 = vpop.permute.xlu1 %997  ;;  %v1313_v59 = vsel %vm1307_vm13, %v1276_v32, %v980_v20  ;;  %v920_v20 = vsel %vm889_vm4, %v2630_v23, %v919_v39  ;;  %v1146_v6 = vsel %vm1122_vm8, %v1109_v28, %v2702_v21  ;;  %v2913_v4 = vor.u32 %v954_v1, %v953_v54 }
  0xde   : > { %865 = vrot.lane.b32.xlu0 %v786_v34, %s2048_s25  ;;  %v2006_v34 = vld [vmem:[%s2095_s19 + $0x18] sm:$0xff]   ;;  %v3453_v1 = vrot.slane %v2563_v60, 3  ;;  %v2971_v60 = vld [vmem:[%s2095_s19 + $0x50] sm:$0xff]  }
  0xdf   : > { %881 = vrot.lane.b32.xlu1 %v802_v16, %s2048_s25  ;;  %v1093_v57 = vsel %vm1085_vm7, %v2006_v34, %v2667_v7  ;;  %v2903_v7 = vor.u32 %v922_v18, %v921_v58  ;;  %v956_v18 = vsel %vm889_vm4, %v951_v14, %v2913_v4  ;;  %v1831_v34 = vcombine.low %v2809_v8, %v2809_v8 }
  0xe0   : > { %v1054_v61 = vpop.permute.xlu0 %1053  ;;  %v1130_v49 = vsel %vm1122_vm8, %v1093_v57, %v2695_v45  ;;  %v1183_v45 = vsel %vm1159_vm9, %v1146_v6, %v2722_v9 }
  0xe1   : > { %v1070_v52 = vpop.permute.xlu1 %1069  ;;  %v1350_v16 = vsel %vm1344_vm14, %v1313_v59, %v1054_v61  ;;  %v1167_v23 = vsel %vm1159_vm9, %v1130_v49, %v2719_v2  ;;  %v1220_v21 = vsel %vm1196_vm10, %v1183_v45, %v2768_v38  ;;  %v924_v9 = vsel %vm889_vm4, %v919_v39, %v2903_v7 }
  0xe2   : > { %867 = vrot.lane.b32.xlu0 %v2867_v37, %s2048_s25  ;;  %1899 = vmatprep.mubr.msk.bf16.mxu0 %vm1424_vm15, %v1350_v16  ;;  %v1366_v12 = vsel %vm1344_vm14, %v1329_v5, %v1070_v52  ;;  %v1204_v40 = vsel %vm1196_vm10, %v1167_v23, %v2758_v33  ;;  %v1257_v15 = vsel %vm1233_vm11, %v1220_v21, %v2799_v46  ;;  %v1025_v33 = vrot.slane %v2730_v0, 3 }
  0xe3   : > { %883 = vrot.lane.b32.xlu1 %v2862_v11, %s2048_s25  ;;  %1915 = vmatprep.mubr.msk.bf16.mxu1 %vm1424_vm15, %v1366_v12  ;;  %v1241_v2 = vsel %vm1233_vm11, %v1204_v40, %v2793_v19  ;;  %v1294_v38 = vsel %vm1270_vm12, %v1257_v15, %v2817_v42  ;;  %v1041_v46 = vrot.slane %v2727_v51, 3  ;;  %v417_v61 = vrot.slane %v2753_v50, 1 }
  0xe4   : > { %v2909_v44 = vpop.permute.xlu0 %499  ;;  %v1278_v32 = vsel %vm1270_vm12, %v1241_v2, %v2814_v24  ;;  %v1331_v24 = vsel %vm1307_vm13, %v1294_v38, %v998_v41  ;;  %v3452_v41 = vrot.slane %v2588_v17, 1  ;;  %v3454_v52 = vrot.slane %v2596_v62, 1 }
  0xe5   : > { %v2919_v13 = vpop.permute.xlu1 %515  ;;  %v1315_v19 = vsel %vm1307_vm13, %v1278_v32, %v982_v25  ;;  %v3451_v25 = vrot.slane %v2566_v10, 3  ;;  %v1042_v5 = vsel %vm1011_vm5, %v3453_v1, %v1041_v46  ;;  %v481_v10 = vrot.slane %v2763_v29, 1  ;;  %v246_v32 = vld [vmem:[%s2095_s19 + $0x98] sm:$0xf] }
  0xe6   : > { %987 = vrot.lane.b32.xlu0 %v920_v20, %s2049_s26  ;;  %v413_v14 = vor.u32 %v2591_v43, %v3452_v41  ;;  %v477_v16 = vor.u32 %v2599_v36, %v3454_v52  ;;  %v1027_v50 = vrot.slane %v2971_v60, 3  ;;  %v1043_v29 = vrot.slane %v2820_v35, 3 }
  0xe7   : > { %1003 = vrot.lane.b32.xlu1 %v952_v31, %s2049_s26  ;;  %v1026_v42 = vsel %vm1011_vm5, %v3451_v25, %v1025_v33  ;;  %v487_v57 = vshll.u32 %v1831_v34, 16  ;;  %v421_v20 = vor.u32 %v2756_v22, %v417_v61  ;;  %v485_v6 = vor.u32 %v2766_v26, %v481_v10 }
  0xe8   : > { %v1056_v58 = vpop.permute.xlu0 %1055  ;;  %v418_v43 = vsel %vm342_vm2, %v413_v14, %v417_v61  ;;  %v482_v36 = vsel %vm342_vm2, %v477_v16, %v481_v10  ;;  %v1028_v12 = vsel %vm1011_vm5, %v1025_v33, %v1027_v50  ;;  %v1044_v49 = vsel %vm1011_vm5, %v1041_v46, %v1043_v29  ;;  %v3456_v33 = vld [vmem:[#allocation10_spill] sm:$0xff] }
  0xe9   : > { %v1072_v30 = vpop.permute.xlu1 %1071  ;;  %v1352_v59 = vsel %vm1344_vm14, %v1315_v19, %v1056_v58  ;;  %v489_v23 = vrot.slane %v487_v57, 1  ;;  %v3455_v45 = vrot.slane %v2187_v56, 1  ;;  %v563_v15 = vrot.slane %v1831_v34, 1  ;;  %v3460_v57 = vld [vmem:[#allocation5_spill] sm:$0xff] }
  0xea   : > { %v1368_v39 = vsel %vm1344_vm14, %v1331_v24, %v1072_v30  ;;  %989 = vrot.lane.b32.xlu0 %v924_v9, %s2049_s26  ;;  %1900 = vmatmul.mubr.msk.bf16.gmra.mxu0 %vm1424_vm15, %v1352_v59  ;;  %v3457_v38 = vrot.slane %v2174_v48, 1  ;;  %v3458_v19 = vrot.slane %v2730_v0, 1  ;;  %v1833_v46 = vcombine.low %v246_v32, %v246_v32  ;;  %v3459_v30 = vld [vmem:[#allocation9_spill] sm:$0xff] }
  0xeb   : > { %1005 = vrot.lane.b32.xlu1 %v956_v18, %s2049_s26  ;;  %1916 = vmatmul.mubr.msk.bf16.vlgmr.msra.gmra.mxu1 %vm1424_vm15, %v1368_v39  ;;  %v426_v22 = vsel %vm342_vm2, %v421_v20, %v3455_v45  ;;  %v490_v21 = vsel %vm342_vm2, %v485_v6, %v489_v23  ;;  %v607_v18 = vrot.slane %v2820_v35, 1  ;;  %v564_v59 = vsel %vm527_vm0, %v3459_v30, %v563_v15 }
  0xec   : > { %v2954_v54 = vpop.permute.xlu0 %501  ;;  %v548_v58 = vsel %vm527_vm0, %v3458_v19, %v3457_v38  ;;  %v609_v25 = vrot.slane %v1833_v46, 1  ;;  %v684_v41 = vrot.slane %v2187_v56, 2  ;;  %v718_v61 = vrot.slane %v716_v27, 1 }
  0xed   : > { %v2965_v17 = vpop.permute.xlu1 %517  ;;  %v721_v1 = vrot.slane %v719_v53, 2  ;;  %v728_v52 = vshll.u32 %v1833_v46, 16  ;;  %v3461_v53 = vld [vmem:[#allocation11_spill] sm:$0xff] }
  0xee   : > { %1061 = vrot.lane.b32.xlu0 %v1026_v42, %s2050_s27  ;;  %v683_v42 = vrot.slane %v2204_v63, 1  ;;  %v610_v56 = vsel %vm527_vm0, %v607_v18, %v609_v25  ;;  %v3073_v25 = vld [vmem:[%s2095_s19 + $0xa0] ss:$0 sps:$4 sm:$0xff]  }
  0xef   : > { %1077 = vrot.lane.b32.xlu1 %v1042_v5, %s2050_s27  ;;  %v725_v5 = vshrl.u32 %v1833_v46, 16  ;;  %v722_v34 = vor.u32 %v721_v1, %v718_v61 }
  0xf0   : > { %v2974_v62 = vpop.permute.xlu0 %573  ;;  %v685_v63 = vor.u32 %v684_v41, %v683_v42  ;;  %v3464_v41 = vrot.slane %v2184_v55, 2  ;;  %v851_v55 = vrot.slane %v3073_v25, 2 }
  0xf1   : > { %v2978_v8 = vpop.permute.xlu1 %589 }
  0xf2   : > { %507 = vrot.lane.b32.xlu0 %v418_v43, %s2046_s23  ;;  %v727_v43 = vrot.slane %v725_v5, 1 }
  0xf3   : > { %523 = vrot.lane.b32.xlu1 %v482_v36, %s2046_s23  ;;  %v730_v36 = vrot.slane %v728_v52, 2 }
  0xf4   : > { %v2986_v28 = vpop.permute.xlu0 %575 }
  0xf5   : > { %v2992_v31 = vpop.permute.xlu1 %591  ;;  %v731_v23 = vor.u32 %v730_v36, %v727_v43 }
  0xf6   : > { %1063 = vrot.lane.b32.xlu0 %v1028_v12, %s2050_s27  ;;  %v686_v12 = vsel %vm647_vm3, %v3461_v53, %v685_v63  ;;  %v3467_v53 = vld [vmem:[#allocation2_spill] sm:$0xff] }
  0xf7   : > { %1079 = vrot.lane.b32.xlu1 %v1044_v49, %s2050_s27  ;;  %v3462_v49 = vld [vmem:[#allocation12_spill] sm:$0xff]  ;;  %v732_v38 = vsel %vm647_vm3, %v722_v34, %v731_v23  ;;  %v967_v23 = vshrl.u32 %v3073_v25, 16 }
  0xf8   : > { %v2999_v40 = vpop.permute.xlu0 %619  ;;  %v723_v6 = vsel %vm647_vm3, %v3462_v49, %v722_v34  ;;  %v2009_v34 = vld [vmem:[%s2095_s19 + $0x60] sm:$0xff]  }
  0xf9   : > { %v3002_v2 = vpop.permute.xlu1 %635  ;;  %v1111_v43 = vsel %vm1085_vm7, %v2009_v34, %v2919_v13  ;;  %v970_v13 = vshll.u32 %v3073_v25, 16 }
  0xfa   : > { %509 = vrot.lane.b32.xlu0 %v426_v22, %s2046_s23  ;;  %v247_v22 = vld [vmem:[%s2095_s19 + $0x9c] sm:$0xf] }
  0xfb   : > { %525 = vrot.lane.b32.xlu1 %v490_v21, %s2046_s23  ;;  %v3463_v21 = vld [vmem:[#allocation6_spill] sm:$0xff] }
  0xfc   : > { %v3006_v26 = vpop.permute.xlu0 %621  ;;  %v690_v15 = vsel %vm647_vm3, %v685_v63, %v3463_v21  ;;  %v2008_v63 = vld [vmem:[%s2095_s19 + $0x20] sm:$0xff]  }
  0xfd   : > { %v3009_v9 = vpop.permute.xlu1 %637 }
  0xfe   : > { %581 = vrot.lane.b32.xlu0 %v2775_v47, %s2044_s21  ;;  %v608_v47 = vsel %vm527_vm0, %v3459_v30, %v607_v18  ;;  %v805_v30 = vrot.slane %v1833_v46, 2  ;;  %v3465_v46 = vrot.slane %v2174_v48, 2 }
  0xff   : > { %597 = vrot.lane.b32.xlu1 %v3456_v33, %s2044_s21 }
 0x100   : > { %v3021_v24 = vpop.permute.xlu0 %741  ;;  %v790_v61 = vsel %vm769_vm1, %v3465_v46, %v3464_v41  ;;  %v972_v41 = vrot.slane %v970_v13, 3  ;;  %v3470_v13 = vld [vmem:[#allocation3_spill] sm:$0xff] }
 0x101   : > { %v3025_v39 = vpop.permute.xlu1 %757 }
 0x102   : > { %583 = vrot.lane.b32.xlu0 %v548_v58, %s2044_s21 }
 0x103   : > { %599 = vrot.lane.b32.xlu1 %v564_v59, %s2044_s21  ;;  %s3242_s21 = scalar_lea.vmem %s3403_s3, %s1944_s11 }
 0x104   : > { %v3033_v14 = vpop.permute.xlu0 %743 }
 0x105   : > { %v3039_v16 = vpop.permute.xlu1 %759 }
 0x106   : > { %627 = vrot.lane.b32.xlu0 %v548_v58, %s2043_s20  ;;  %v3061_v58 = vcombine.low %v246_v32, %v247_v22 }
 0x107   : > { %643 = vrot.lane.b32.xlu1 %v608_v47, %s2043_s20 }
 0x108   : > { %v816_v10 = vpop.permute.xlu0 %815  ;;  %v849_v47 = vrot.slane %v3061_v58, 2  ;;  %v958_v32 = vshrl.u32 %v3061_v58, 16  ;;  %v961_v42 = vshll.u32 %v3061_v58, 16 }
 0x109   : > { %v832_v27 = vpop.permute.xlu1 %831 }
 0x10a   : > { %629 = vrot.lane.b32.xlu0 %v3460_v57, %s2043_s20  ;;  %v850_v52 = vsel %vm769_vm1, %v2833_v3, %v849_v47  ;;  %v963_v48 = vrot.slane %v961_v42, 3 }
 0x10b   : > { %645 = vrot.lane.b32.xlu1 %v610_v56, %s2043_s20  ;;  %v1095_v56 = vsel %vm1085_vm7, %v2008_v63, %v2909_v44  ;;  %v1148_v44 = vsel %vm1122_vm8, %v1111_v43, %v2978_v8  ;;  %v2012_v43 = vld [vmem:[%s2095_s19 + $0x58] sm:$0xff]  }
 0x10c   : > { %v3049_v20 = vpop.permute.xlu0 %817  ;;  %v1132_v36 = vsel %vm1122_vm8, %v1095_v56, %v2974_v62  ;;  %v1185_v62 = vsel %vm1159_vm9, %v1148_v44, %v3002_v2 }
 0x10d   : > { %v3053_v45 = vpop.permute.xlu1 %833  ;;  %v1169_v49 = vsel %vm1159_vm9, %v1132_v36, %v2999_v40  ;;  %v852_v40 = vsel %vm769_vm1, %v849_v47, %v851_v55  ;;  %v1029_v36 = vrot.slane %v2012_v43, 3 }
 0x10e   : > { %749 = vrot.lane.b32.xlu0 %v686_v12, %s2047_s24  ;;  %v926_v12 = vrot.slane %v3467_v53, 3  ;;  %v1206_v22 = vsel %vm1196_vm10, %v1169_v49, %v3021_v24 }
 0x10f   : > { %765 = vrot.lane.b32.xlu1 %v723_v6, %s2047_s24  ;;  %v1243_v8 = vsel %vm1233_vm11, %v1206_v22, %v816_v10  ;;  %v969_v10 = vrot.slane %v967_v23, 2 }
 0x110   : > { %v862_v33 = vpop.permute.xlu0 %861 }
 0x111   : > { %v878_v19 = vpop.permute.xlu1 %877 }
 0x112   : > { %751 = vrot.lane.b32.xlu0 %v690_v15, %s2047_s24  ;;  %v1222_v15 = vsel %vm1196_vm10, %v1185_v62, %v3025_v39  ;;  %v3471_v62 = vrot.slane %v3470_v13, 3 }
 0x113   : > { %767 = vrot.lane.b32.xlu1 %v732_v38, %s2047_s24  ;;  %v1259_v38 = vsel %vm1233_vm11, %v1222_v15, %v832_v27  ;;  %v2010_v27 = vld [vmem:[%s2095_s19 + $0x28] sm:$0xff]  }
 0x114   : > { %v3065_v18 = vpop.permute.xlu0 %863  ;;  %v1032_v22 = vsel %vm1011_vm5, %v1029_v36, %v3471_v62 }
 0x115   : > { %v3067_v59 = vpop.permute.xlu1 %879 }
 0x116   : > { %823 = vrot.lane.b32.xlu0 %v2867_v37, %s2045_s22  ;;  %v806_v37 = vsel %vm769_vm1, %v2833_v3, %v805_v30  ;;  %v3466_v3 = vld [vmem:[#allocation4_spill] sm:$0xff]  ;;  %v1280_v30 = vsel %vm1270_vm12, %v1243_v8, %v862_v33  ;;  %v1097_v33 = vsel %vm1085_vm7, %v2010_v27, %v2954_v54 }
 0x117   : > { %839 = vrot.lane.b32.xlu1 %v2862_v11, %s2045_s22  ;;  %v960_v11 = vrot.slane %v958_v32, 2  ;;  %v925_v57 = vrot.slane %v3466_v3, 2  ;;  %v1296_v32 = vsel %vm1270_vm12, %v1259_v38, %v878_v19  ;;  %v2011_v19 = vld [vmem:[%s2095_s19 + $0x68] sm:$0xff]  }
 0x118   : > { %v984_v1 = vpop.permute.xlu0 %983 }
 0x119   : > { %v1000_v5 = vpop.permute.xlu1 %999  ;;  %v964_v2 = vor.u32 %v963_v48, %v960_v11  ;;  %v927_v24 = vor.u32 %v926_v12, %v925_v57  ;;  %v1317_v39 = vsel %vm1307_vm13, %v1280_v30, %v984_v1  ;;  %v1113_v1 = vsel %vm1085_vm7, %v2011_v19, %v2965_v17  ;;  %v2014_v19 = vld [vmem:[%s2095_s19 + $0x70] sm:$0xff]  }
 0x11a   : > { %825 = vrot.lane.b32.xlu0 %v790_v61, %s2045_s22  ;;  %v1333_v46 = vsel %vm1307_vm13, %v1296_v32, %v1000_v5  ;;  %v1134_v5 = vsel %vm1122_vm8, %v1097_v33, %v2986_v28  ;;  %v1150_v63 = vsel %vm1122_vm8, %v1113_v1, %v2992_v31  ;;  %v973_v28 = vor.u32 %v972_v41, %v969_v10 }
 0x11b   : > { %841 = vrot.lane.b32.xlu1 %v806_v37, %s2045_s22  ;;  %v928_v54 = vsel %vm889_vm4, %v2903_v7, %v927_v24  ;;  %v1171_v56 = vsel %vm1159_vm9, %v1134_v5, %v3006_v26  ;;  %v965_v17 = vsel %vm889_vm4, %v2913_v4, %v964_v2  ;;  %v1187_v11 = vsel %vm1159_vm9, %v1150_v63, %v3009_v9  ;;  %v3469_v9 = vld [vmem:[#allocation8_spill] sm:$0xff] }
 0x11c   : > { %v986_v6 = vpop.permute.xlu0 %985  ;;  %v1208_v48 = vsel %vm1196_vm10, %v1171_v56, %v3033_v14  ;;  %v1224_v34 = vsel %vm1196_vm10, %v1187_v11, %v3039_v16  ;;  %v932_v14 = vsel %vm889_vm4, %v927_v24, %v3469_v9  ;;  %v974_v57 = vsel %vm889_vm4, %v964_v2, %v973_v28 }
 0x11d   : > { %v1002_v21 = vpop.permute.xlu1 %1001  ;;  %v1245_v31 = vsel %vm1233_vm11, %v1208_v48, %v3049_v20  ;;  %v1261_v26 = vsel %vm1233_vm11, %v1224_v34, %v3053_v45  ;;  %v1045_v45 = vrot.slane %v3061_v58, 3 }
 0x11e   : > { %869 = vrot.lane.b32.xlu0 %v790_v61, %s2048_s25  ;;  %v1282_v4 = vsel %vm1270_vm12, %v1245_v31, %v3065_v18  ;;  %v1298_v16 = vsel %vm1270_vm12, %v1261_v26, %v3067_v59  ;;  %v1030_v59 = vsel %vm1011_vm5, %v1027_v50, %v1029_v36  ;;  %v2015_v36 = vld [vmem:[%s2095_s19 + $0x38] sm:$0xff]  }
 0x11f   : > { %885 = vrot.lane.b32.xlu1 %v850_v52, %s2048_s25  ;;  %v3468_v52 = vld [vmem:[#allocation7_spill] sm:$0xff]  ;;  %v1319_v20 = vsel %vm1307_vm13, %v1282_v4, %v986_v6  ;;  %v1335_v53 = vsel %vm1307_vm13, %v1298_v16, %v1002_v21  ;;  %v1046_v49 = vsel %vm1011_vm5, %v1043_v29, %v1045_v45  ;;  %v1047_v6 = vrot.slane %v3073_v25, 3 }
 0x120   : > { %v1058_v42 = vpop.permute.xlu0 %1057 }
 0x121   : > { %v1074_v61 = vpop.permute.xlu1 %1073  ;;  %v1354_v47 = vsel %vm1344_vm14, %v1317_v39, %v1058_v42  ;;  %v1048_v60 = vsel %vm1011_vm5, %v1045_v45, %v1047_v6 }
 0x122   : > { %v1370_v37 = vsel %vm1344_vm14, %v1333_v46, %v1074_v61  ;;  %871 = vrot.lane.b32.xlu0 %v3468_v52, %s2048_s25  ;;  %1903 = vmatprep.mubr.msk.bf16.mxu0 %vm1424_vm15, %v1354_v47 }
 0x123   : > { %887 = vrot.lane.b32.xlu1 %v852_v40, %s2048_s25  ;;  %1919 = vmatprep.mubr.msk.bf16.mxu1 %vm1424_vm15, %v1370_v37  ;;  %v2013_v37 = vld [vmem:[%s2095_s19 + $0x30] sm:$0xff]  }
 0x124   : > { %v3143_v55 = vpop.permute.xlu0 %503 }
 0x125   : > { %v520_v7 = vpop.permute.xlu1 %519  ;;  %v1099_v52 = vsel %vm1085_vm7, %v2013_v37, %v3143_v55 }
 0x126   : > { %991 = vrot.lane.b32.xlu0 %v928_v54, %s2049_s26  ;;  %v1115_v1 = vsel %vm1085_vm7, %v2014_v19, %v520_v7 }
 0x127   : > { %1007 = vrot.lane.b32.xlu1 %v965_v17, %s2049_s26 }
 0x128   : > { %v1060_v3 = vpop.permute.xlu0 %1059 }
 0x129   : > { %v1076_v18 = vpop.permute.xlu1 %1075  ;;  %v1356_v12 = vsel %vm1344_vm14, %v1319_v20, %v1060_v3  ;;  %v2016_v3 = vld [vmem:[%s2095_s19 + $0x78] sm:$0xff]  }
 0x12a   : > { %v1372_v44 = vsel %vm1344_vm14, %v1335_v53, %v1076_v18  ;;  %993 = vrot.lane.b32.xlu0 %v932_v14, %s2049_s26  ;;  %1904 = vmatmul.mubr.msk.bf16.gmra.mxu0 %vm1424_vm15, %v1356_v12 }
 0x12b   : > { %1009 = vrot.lane.b32.xlu1 %v974_v57, %s2049_s26  ;;  %1920 = vmatmul.mubr.msk.bf16.gmra.mxu1 %vm1424_vm15, %v1372_v44 }
 0x12c   : > { %v506_v58 = vpop.permute.xlu0 %505 }
 0x12d   : > { %v522_v23 = vpop.permute.xlu1 %521  ;;  %v1101_v16 = vsel %vm1085_vm7, %v2015_v36, %v506_v58  ;;  %v2018_v36 = vld [vmem:[%s2095_s19 + $0x80] sm:$0xff]  }
 0x12e   : > { %1065 = vrot.lane.b32.xlu0 %v1030_v59, %s2050_s27  ;;  %v1117_v57 = vsel %vm1085_vm7, %v2016_v3, %v522_v23 }
 0x12f   : > { %1081 = vrot.lane.b32.xlu1 %v1046_v49, %s2050_s27 }
 0x130   : > { %v578_v21 = vpop.permute.xlu0 %577 }
 0x131   : > { %v594_v50 = vpop.permute.xlu1 %593  ;;  %v1136_v5 = vsel %vm1122_vm8, %v1099_v52, %v578_v21 }
 0x132   : > { %1067 = vrot.lane.b32.xlu0 %v1032_v22, %s2050_s27  ;;  %v1152_v54 = vsel %vm1122_vm8, %v1115_v1, %v594_v50 }
 0x133   : > { %1083 = vrot.lane.b32.xlu1 %v1048_v60, %s2050_s27 }
 0x134   : > { %v580_v35 = vpop.permute.xlu0 %579 }
 0x135   : > { %v596_v29 = vpop.permute.xlu1 %595  ;;  %v1138_v45 = vsel %vm1122_vm8, %v1101_v16, %v580_v35 }
 0x136   : > { %v1154_v53 = vsel %vm1122_vm8, %v1117_v57, %v596_v29  ;;  %v3233_v29 = vld [vmem:[%s3402_s2] ss:$0 sm:$0xff] }
 0x138   : > { %v624_v25 = vpop.permute.xlu0 %623 }
 0x139   : > { %v640_v15 = vpop.permute.xlu1 %639  ;;  %v1173_v63 = vsel %vm1159_vm9, %v1136_v5, %v624_v25 }
 0x13a   : > { %v1189_v17 = vsel %vm1159_vm9, %v1152_v54, %v640_v15 }
 0x13c   : > { %v626_v8 = vpop.permute.xlu0 %625 }
 0x13d   : > { %v642_v40 = vpop.permute.xlu1 %641  ;;  %v1175_v18 = vsel %vm1159_vm9, %v1138_v45, %v626_v8 }
 0x13e   : > { %v1191_v44 = vsel %vm1159_vm9, %v1154_v53, %v642_v40 }
 0x140   : > { %v746_v38 = vpop.permute.xlu0 %745 }
 0x141   : > { %v762_v30 = vpop.permute.xlu1 %761  ;;  %v1210_v28 = vsel %vm1196_vm10, %v1173_v63, %v746_v38 }
 0x142   : > { %v1226_v48 = vsel %vm1196_vm10, %v1189_v17, %v762_v30 }
 0x144   : > { %v748_v2 = vpop.permute.xlu0 %747 }
 0x145   : > { %v764_v24 = vpop.permute.xlu1 %763  ;;  %v1212_v59 = vsel %vm1196_vm10, %v1175_v18, %v748_v2 }
 0x146   : > { %v1228_v49 = vsel %vm1196_vm10, %v1191_v44, %v764_v24 }
 0x148   : > { %v820_v32 = vpop.permute.xlu0 %819 }
 0x149   : > { %v836_v39 = vpop.permute.xlu1 %835  ;;  %v1247_v55 = vsel %vm1233_vm11, %v1210_v28, %v820_v32 }
 0x14a   : > { %v1263_v7 = vsel %vm1233_vm11, %v1226_v48, %v836_v39 }
 0x14c   : > { %v822_v42 = vpop.permute.xlu0 %821 }
 0x14d   : > { %v838_v10 = vpop.permute.xlu1 %837  ;;  %v1249_v6 = vsel %vm1233_vm11, %v1212_v59, %v822_v42 }
 0x14e   : > { %v1265_v23 = vsel %vm1233_vm11, %v1228_v49, %v838_v10 }
 0x150   : > { %v866_v41 = vpop.permute.xlu0 %865 }
 0x151   : > { %v882_v46 = vpop.permute.xlu1 %881  ;;  %v1284_v34 = vsel %vm1270_vm12, %v1247_v55, %v866_v41 }
 0x152   : > { %v1300_v31 = vsel %vm1270_vm12, %v1263_v7, %v882_v46 }
 0x154   : > { %v868_v61 = vpop.permute.xlu0 %867 }
 0x155   : > { %v884_v47 = vpop.permute.xlu1 %883  ;;  %v1286_v13 = vsel %vm1270_vm12, %v1249_v6, %v868_v61 }
 0x156   : > { %v1302_v62 = vsel %vm1270_vm12, %v1265_v23, %v884_v47 }
 0x158   : > { %v988_v27 = vpop.permute.xlu0 %987 }
 0x159   : > { %v1004_v33 = vpop.permute.xlu1 %1003  ;;  %v1321_v26 = vsel %vm1307_vm13, %v1284_v34, %v988_v27 }
 0x15a   : > { %v1337_v9 = vsel %vm1307_vm13, %v1300_v31, %v1004_v33 }
 0x15c   : > { %v990_v56 = vpop.permute.xlu0 %989 }
 0x15d   : > { %v1006_v11 = vpop.permute.xlu1 %1005  ;;  %v1323_v22 = vsel %vm1307_vm13, %v1286_v13, %v990_v56 }
 0x15e   : > { %v1339_v60 = vsel %vm1307_vm13, %v1302_v62, %v1006_v11 }
 0x160   : > { %v1062_v4 = vpop.permute.xlu0 %1061 }
 0x161   : > { %v1078_v14 = vpop.permute.xlu1 %1077  ;;  %v1358_v43 = vsel %vm1344_vm14, %v1321_v26, %v1062_v4 }
 0x162   : > { %v1374_v20 = vsel %vm1344_vm14, %v1337_v9, %v1078_v14  ;;  %1907 = vmatprep.mubr.msk.bf16.mxu0 %vm1424_vm15, %v1358_v43  ;;  %v2017_v14 = vld [vmem:[%s2095_s19 + $0x40] sm:$0xff]  }
 0x163   : > { %1923 = vmatprep.mubr.msk.bf16.mxu1 %vm1424_vm15, %v1374_v20 }
 0x164   : > { %v508_v12 = vpop.permute.xlu0 %507 }
 0x165   : > { %v524_v58 = vpop.permute.xlu1 %523  ;;  %v1103_v43 = vsel %vm1085_vm7, %v2017_v14, %v508_v12 }
 0x166   : > { %v1119_v16 = vsel %vm1085_vm7, %v2018_v36, %v524_v58 }
 0x168   : > { %v1064_v21 = vpop.permute.xlu0 %1063 }
 0x169   : > { %v1080_v50 = vpop.permute.xlu1 %1079  ;;  %v1360_v35 = vsel %vm1344_vm14, %v1323_v22, %v1064_v21 }
 0x16a   : > { %v1376_v25 = vsel %vm1344_vm14, %v1339_v60, %v1080_v50  ;;  %1908 = vmatmul.mubr.msk.bf16.gmra.mxu0 %vm1424_vm15, %v1360_v35 }
 0x16b   : > { %v1897_v15 = vpop.f32.mrf.mxu0  ;;  %1924 = vmatmul.mubr.msk.bf16.gmra.mxu1 %vm1424_vm15, %v1376_v25 }
 0x16c   : > { %v1508_v8 = vadd.f32 %v1897_v15, %v3233_v29  ;;  %v510_v40 = vpop.permute.xlu0 %509 }
 0x16d   : > { %v526_v38 = vpop.permute.xlu1 %525  ;;  %v1499_v30 = vpop.f32.mrf.mxu0  ;;  %v1105_v59 = vsel %vm1085_vm7, %v2730_v0, %v510_v40 }
 0x16e   : > { %v1644_v2 = vmax.f32 %v1508_v8, 0.0  ;;  %v1500_v24 = vadd.f32 %v3233_v29, %v1499_v30  ;;  %v1121_v58 = vsel %vm1085_vm7, %v2727_v51, %v526_v38 }
 0x16f   : > { %v1898_v32 = vpop.f32.mrf.mxu0 }
 0x170   : > { %1680 = vst.msk [vmem:[%s3242_s21 + $0x10] sm:$0xff] %vm1196_vm10, %v1644_v2  ;;  %v1642_v39 = vmax.f32 %v1500_v24, 0.0  ;;  %v1511_v42 = vadd.f32 %v1898_v32, %v3233_v29  ;;  %v582_v10 = vpop.permute.xlu0 %581 }
 0x171   : > { %v598_v41 = vpop.permute.xlu1 %597  ;;  %v1502_v46 = vpop.f32.mrf.mxu0  ;;  %v1140_v20 = vsel %vm1122_vm8, %v1103_v43, %v582_v10 }
 0x172   : > { %1678 = vst.msk [vmem:[%s3242_s21] sm:$0xff] %vm1196_vm10, %v1642_v39  ;;  %v1645_v61 = vmax.f32 %v1511_v42, 0.0  ;;  %v1503_v47 = vadd.f32 %v3233_v29, %v1502_v46  ;;  %v1156_v3 = vsel %vm1122_vm8, %v1119_v16, %v598_v41 }
 0x174   : > { %1681 = vst.msk [vmem:[%s3242_s21 + $0x18] sm:$0xff] %vm1196_vm10, %v1645_v61  ;;  %v1643_v27 = vmax.f32 %v1503_v47, 0.0  ;;  %v584_v33 = vpop.permute.xlu0 %583 }
 0x175   : > { %v600_v37 = vpop.permute.xlu1 %599  ;;  %v1142_v6 = vsel %vm1122_vm8, %v1105_v59, %v584_v33 }
 0x176   : > { %1679 = vst.msk [vmem:[%s3242_s21 + $0x8] sm:$0xff] %vm1196_vm10, %v1643_v27  ;;  %v1158_v62 = vsel %vm1122_vm8, %v1121_v58, %v600_v37 }
 0x178   : > { %v628_v52 = vpop.permute.xlu0 %627 }
 0x179   : > { %v644_v19 = vpop.permute.xlu1 %643  ;;  %v1177_v57 = vsel %vm1159_vm9, %v1140_v20, %v628_v52 }
 0x17a   : > { %v1193_v53 = vsel %vm1159_vm9, %v1156_v3, %v644_v19 }
 0x17c   : > { %v630_v1 = vpop.permute.xlu0 %629 }
 0x17d   : > { %v646_v5 = vpop.permute.xlu1 %645  ;;  %v1179_v22 = vsel %vm1159_vm9, %v1142_v6, %v630_v1 }
 0x17e   : > { %v1195_v50 = vsel %vm1159_vm9, %v1158_v62, %v646_v5 }
 0x180   : > { %v750_v54 = vpop.permute.xlu0 %749 }
 0x181   : > { %v766_v63 = vpop.permute.xlu1 %765  ;;  %v1214_v18 = vsel %vm1196_vm10, %v1177_v57, %v750_v54 }
 0x182   : > { %v1230_v12 = vsel %vm1196_vm10, %v1193_v53, %v766_v63 }
 0x184   : > { %v752_v56 = vpop.permute.xlu0 %751 }
 0x185   : > { %v768_v17 = vpop.permute.xlu1 %767  ;;  %v1216_v35 = vsel %vm1196_vm10, %v1179_v22, %v752_v56 }
 0x186   : > { %v1232_v8 = vsel %vm1196_vm10, %v1195_v50, %v768_v17 }
 0x188   : > { %v824_v28 = vpop.permute.xlu0 %823 }
 0x189   : > { %v840_v11 = vpop.permute.xlu1 %839  ;;  %v1251_v49 = vsel %vm1233_vm11, %v1214_v18, %v824_v28 }
 0x18a   : > { %v1267_v23 = vsel %vm1233_vm11, %v1230_v12, %v840_v11 }
 0x18c   : > { %v826_v48 = vpop.permute.xlu0 %825 }
 0x18d   : > { %v842_v55 = vpop.permute.xlu1 %841  ;;  %v1253_v40 = vsel %vm1233_vm11, %v1216_v35, %v826_v48 }
 0x18e   : > { %v1269_v30 = vsel %vm1233_vm11, %v1232_v8, %v842_v55 }
 0x190   : > { %v870_v7 = vpop.permute.xlu0 %869 }
 0x191   : > { %v886_v34 = vpop.permute.xlu1 %885  ;;  %v1288_v13 = vsel %vm1270_vm12, %v1251_v49, %v870_v7 }
 0x192   : > { %v1304_v21 = vsel %vm1270_vm12, %v1267_v23, %v886_v34 }
 0x194   : > { %v872_v31 = vpop.permute.xlu0 %871 }
 0x195   : > { %v888_v26 = vpop.permute.xlu1 %887  ;;  %v1290_v2 = vsel %vm1270_vm12, %v1253_v40, %v872_v31 }
 0x196   : > { %v1306_v24 = vsel %vm1270_vm12, %v1269_v30, %v888_v26 }
 0x198   : > { %v992_v4 = vpop.permute.xlu0 %991 }
 0x199   : > { %v1008_v9 = vpop.permute.xlu1 %1007  ;;  %v1325_v0 = vsel %vm1307_vm13, %v1288_v13, %v992_v4 }
 0x19a   : > { %v1341_v51 = vsel %vm1307_vm13, %v1304_v21, %v1008_v9 }
 0x19c   : > { %v994_v45 = vpop.permute.xlu0 %993 }
 0x19d   : > { %v1010_v44 = vpop.permute.xlu1 %1009  ;;  %v1327_v32 = vsel %vm1307_vm13, %v1290_v2, %v994_v45 }
 0x19e   : > { %v1343_v42 = vsel %vm1307_vm13, %v1306_v24, %v1010_v44 }
 0x1a0   : > { %v1066_v60 = vpop.permute.xlu0 %1065 }
 0x1a1   : > { %v1082_v25 = vpop.permute.xlu1 %1081  ;;  %v1362_v15 = vsel %vm1344_vm14, %v1325_v0, %v1066_v60 }
 0x1a2   : > { %v1378_v38 = vsel %vm1344_vm14, %v1341_v51, %v1082_v25  ;;  %1911 = vmatprep.mubr.msk.bf16.mxu0 %vm1424_vm15, %v1362_v15 }
 0x1a3   : > { %1927 = vmatprep.mubr.msk.bf16.mxu1 %vm1424_vm15, %v1378_v38 }
 0x1a4   : > { %v1068_v39 = vpop.permute.xlu0 %1067 }
 0x1a5   : > { %v1084_v10 = vpop.permute.xlu1 %1083  ;;  %v1364_v41 = vsel %vm1344_vm14, %v1327_v32, %v1068_v39 }
 0x1a6   : > { %v1380_v46 = vsel %vm1344_vm14, %v1343_v42, %v1084_v10  ;;  %1912 = vmatmul.mubr.msk.bf16.gmra.mxu0 %vm1424_vm15, %v1364_v41 }
 0x1a7   : > { %1928 = vmatmul.mubr.msk.bf16.gmra.mxu1 %vm1424_vm15, %v1380_v46 }
 0x1aa   : > { %v1901_v61 = vpop.f32.mrf.mxu0 }
 0x1ab   : > { %v1524_v47 = vadd.f32 %v1901_v61, %v3233_v29  ;;  %v1917_v27 = vpop.f32.mrf.mxu1 }
 0x1ac   : > { %v1588_v33 = vadd.f32 %v1917_v27, %v3233_v29  ;;  %v1515_v37 = vpop.f32.mrf.mxu0 }
 0x1ad   : > { %v1648_v52 = vmax.f32 %v1524_v47, 0.0  ;;  %v1516_v19 = vadd.f32 %v3233_v29, %v1515_v37  ;;  %v1579_v1 = vpop.f32.mrf.mxu1 }
 0x1ae   : > { %v1664_v5 = vmax.f32 %v1588_v33, 0.0  ;;  %v1580_v54 = vadd.f32 %v3233_v29, %v1579_v1  ;;  %v1902_v63 = vpop.f32.mrf.mxu0 }
 0x1af   : > { %1684 = vst.msk [vmem:[%s3242_s21 + $0x30] sm:$0xff] %vm1196_vm10, %v1648_v52  ;;  %v1646_v56 = vmax.f32 %v1516_v19, 0.0  ;;  %v1527_v17 = vadd.f32 %v1902_v63, %v3233_v29  ;;  %v1918_v28 = vpop.f32.mrf.mxu1 }
 0x1b0   : > { %1700 = vst.msk [vmem:[%s3242_s21 + $0xb0] sm:$0xff] %vm1196_vm10, %v1664_v5  ;;  %v1662_v11 = vmax.f32 %v1580_v54, 0.0  ;;  %v1591_v48 = vadd.f32 %v1918_v28, %v3233_v29  ;;  %v1518_v55 = vpop.f32.mrf.mxu0 }
 0x1b1   : > { %1682 = vst.msk [vmem:[%s3242_s21 + $0x20] sm:$0xff] %vm1196_vm10, %v1646_v56  ;;  %v1649_v7 = vmax.f32 %v1527_v17, 0.0  ;;  %v1519_v34 = vadd.f32 %v3233_v29, %v1518_v55  ;;  %v1582_v31 = vpop.f32.mrf.mxu1 }
 0x1b2   : > { %1698 = vst.msk [vmem:[%s3242_s21 + $0xa0] sm:$0xff] %vm1196_vm10, %v1662_v11  ;;  %v1665_v26 = vmax.f32 %v1591_v48, 0.0  ;;  %v1583_v4 = vadd.f32 %v3233_v29, %v1582_v31 }
 0x1b3   : > { %1685 = vst.msk [vmem:[%s3242_s21 + $0x38] sm:$0xff] %vm1196_vm10, %v1649_v7  ;;  %v1647_v9 = vmax.f32 %v1519_v34, 0.0 }
 0x1b4   : > { %1701 = vst.msk [vmem:[%s3242_s21 + $0xb8] sm:$0xff] %vm1196_vm10, %v1665_v26  ;;  %v1663_v14 = vmax.f32 %v1583_v4, 0.0 }
 0x1b5   : > { %1683 = vst.msk [vmem:[%s3242_s21 + $0x28] sm:$0xff] %vm1196_vm10, %v1647_v9 }
 0x1b6   : > { %1699 = vst.msk [vmem:[%s3242_s21 + $0xa8] sm:$0xff] %vm1196_vm10, %v1663_v14 }
 0x1ea   : > { %v1905_v43 = vpop.f32.mrf.mxu0 }
 0x1eb   : > { %v1540_v36 = vadd.f32 %v1905_v43, %v3233_v29  ;;  %v1921_v16 = vpop.f32.mrf.mxu1 }
 0x1ec   : > { %v1604_v20 = vadd.f32 %v1921_v16, %v3233_v29  ;;  %v1531_v3 = vpop.f32.mrf.mxu0 }
 0x1ed   : > { %v1652_v57 = vmax.f32 %v1540_v36, 0.0  ;;  %v1532_v45 = vadd.f32 %v3233_v29, %v1531_v3  ;;  %v1595_v53 = vpop.f32.mrf.mxu1 }
 0x1ee   : > { %v1668_v18 = vmax.f32 %v1604_v20, 0.0  ;;  %v1596_v44 = vadd.f32 %v3233_v29, %v1595_v53  ;;  %v1906_v59 = vpop.f32.mrf.mxu0 }
 0x1ef   : > { %1688 = vst.msk [vmem:[%s3242_s21 + $0x50] sm:$0xff] %vm1196_vm10, %v1652_v57  ;;  %v1650_v12 = vmax.f32 %v1532_v45, 0.0  ;;  %v1543_v49 = vadd.f32 %v1906_v59, %v3233_v29  ;;  %v1922_v58 = vpop.f32.mrf.mxu1 }
 0x1f0   : > { %1704 = vst.msk [vmem:[%s3242_s21 + $0xd0] sm:$0xff] %vm1196_vm10, %v1668_v18  ;;  %v1666_v6 = vmax.f32 %v1596_v44, 0.0  ;;  %v1607_v23 = vadd.f32 %v1922_v58, %v3233_v29  ;;  %v1534_v13 = vpop.f32.mrf.mxu0 }
 0x1f1   : > { %1686 = vst.msk [vmem:[%s3242_s21 + $0x40] sm:$0xff] %vm1196_vm10, %v1650_v12  ;;  %v1653_v62 = vmax.f32 %v1543_v49, 0.0  ;;  %v1535_v22 = vadd.f32 %v3233_v29, %v1534_v13  ;;  %v1598_v21 = vpop.f32.mrf.mxu1 }
 0x1f2   : > { %1702 = vst.msk [vmem:[%s3242_s21 + $0xc0] sm:$0xff] %vm1196_vm10, %v1666_v6  ;;  %v1669_v0 = vmax.f32 %v1607_v23, 0.0  ;;  %v1599_v60 = vadd.f32 %v3233_v29, %v1598_v21 }
 0x1f3   : > { %1689 = vst.msk [vmem:[%s3242_s21 + $0x58] sm:$0xff] %vm1196_vm10, %v1653_v62  ;;  %v1651_v50 = vmax.f32 %v1535_v22, 0.0 }
 0x1f4   : > { %1705 = vst.msk [vmem:[%s3242_s21 + $0xd8] sm:$0xff] %vm1196_vm10, %v1669_v0  ;;  %v1667_v35 = vmax.f32 %v1599_v60, 0.0 }
 0x1f5   : > { %1687 = vst.msk [vmem:[%s3242_s21 + $0x48] sm:$0xff] %vm1196_vm10, %v1651_v50 }
 0x1f6   : > { %1703 = vst.msk [vmem:[%s3242_s21 + $0xc8] sm:$0xff] %vm1196_vm10, %v1667_v35 }
 0x22a   : > { %v1909_v51 = vpop.f32.mrf.mxu0 }
 0x22b   : > { %v1556_v25 = vadd.f32 %v1909_v51, %v3233_v29  ;;  %v1925_v15 = vpop.f32.mrf.mxu1 }
 0x22c   : > { %v1620_v8 = vadd.f32 %v1925_v15, %v3233_v29  ;;  %v1547_v40 = vpop.f32.mrf.mxu0 }
 0x22d   : > { %v1656_v38 = vmax.f32 %v1556_v25, 0.0  ;;  %v1548_v30 = vadd.f32 %v3233_v29, %v1547_v40  ;;  %v1611_v2 = vpop.f32.mrf.mxu1 }
 0x22e   : > { %v1672_v24 = vmax.f32 %v1620_v8, 0.0  ;;  %v1612_v32 = vadd.f32 %v3233_v29, %v1611_v2  ;;  %v1910_v39 = vpop.f32.mrf.mxu0 }
 0x22f   : > { %1692 = vst.msk [vmem:[%s3242_s21 + $0x70] sm:$0xff] %vm1196_vm10, %v1656_v38  ;;  %v1654_v42 = vmax.f32 %v1548_v30, 0.0  ;;  %v1559_v10 = vadd.f32 %v1910_v39, %v3233_v29  ;;  %v1926_v41 = vpop.f32.mrf.mxu1 }
 0x230   : > { %1708 = vst.msk [vmem:[%s3242_s21 + $0xf0] sm:$0xff] %vm1196_vm10, %v1672_v24  ;;  %v1670_v46 = vmax.f32 %v1612_v32, 0.0  ;;  %v1623_v61 = vadd.f32 %v1926_v41, %v3233_v29  ;;  %v1550_v47 = vpop.f32.mrf.mxu0 }
 0x231   : > { %1690 = vst.msk [vmem:[%s3242_s21 + $0x60] sm:$0xff] %vm1196_vm10, %v1654_v42  ;;  %v1657_v27 = vmax.f32 %v1559_v10, 0.0  ;;  %v1551_v33 = vadd.f32 %v3233_v29, %v1550_v47  ;;  %v1614_v37 = vpop.f32.mrf.mxu1 }
 0x232   : > { %1706 = vst.msk [vmem:[%s3242_s21 + $0xe0] sm:$0xff] %vm1196_vm10, %v1670_v46  ;;  %v1673_v52 = vmax.f32 %v1623_v61, 0.0  ;;  %v1615_v19 = vadd.f32 %v3233_v29, %v1614_v37 }
 0x233   : > { %1693 = vst.msk [vmem:[%s3242_s21 + $0x78] sm:$0xff] %vm1196_vm10, %v1657_v27  ;;  %v1655_v1 = vmax.f32 %v1551_v33, 0.0 }
 0x234   : > { %1709 = vst.msk [vmem:[%s3242_s21 + $0xf8] sm:$0xff] %vm1196_vm10, %v1673_v52  ;;  %v1671_v5 = vmax.f32 %v1615_v19, 0.0 }
 0x235   : > { %1691 = vst.msk [vmem:[%s3242_s21 + $0x68] sm:$0xff] %vm1196_vm10, %v1655_v1 }
 0x236   : > { %1707 = vst.msk [vmem:[%s3242_s21 + $0xe8] sm:$0xff] %vm1196_vm10, %v1671_v5 }
 0x266   : > { %v1913_v54 = vpop.f32.mrf.mxu0 }
 0x267   : > { %v1572_v63 = vadd.f32 %v1913_v54, %v3233_v29  ;;  %v1929_v56 = vpop.f32.mrf.mxu1 }
 0x268   : > { %v1636_v17 = vadd.f32 %v1929_v56, %v3233_v29  ;;  %v1563_v28 = vpop.f32.mrf.mxu0 }
 0x269   : > { %v1660_v11 = vmax.f32 %v1572_v63, 0.0  ;;  %v1564_v48 = vadd.f32 %v3233_v29, %v1563_v28  ;;  %v1627_v55 = vpop.f32.mrf.mxu1 }
 0x26a   : > { %v1676_v7 = vmax.f32 %v1636_v17, 0.0  ;;  %v1628_v34 = vadd.f32 %v3233_v29, %v1627_v55  ;;  %v1914_v31 = vpop.f32.mrf.mxu0 }
 0x26b   : > { %1696 = vst.msk [vmem:[%s3242_s21 + $0x90] sm:$0xff] %vm1196_vm10, %v1660_v11  ;;  %v1658_v26 = vmax.f32 %v1564_v48, 0.0  ;;  %v1575_v4 = vadd.f32 %v1914_v31, %v3233_v29  ;;  %v1930_v9 = vpop.f32.mrf.mxu1 }
 0x26c   : > { %1712 = vst.msk [vmem:[%s3242_s21 + $0x110] sm:$0xff] %vm1196_vm10, %v1676_v7  ;;  %v1674_v14 = vmax.f32 %v1628_v34, 0.0  ;;  %v1639_v43 = vadd.f32 %v1930_v9, %v3233_v29  ;;  %v1566_v36 = vpop.f32.mrf.mxu0 }
 0x26d   : > { %1694 = vst.msk [vmem:[%s3242_s21 + $0x80] sm:$0xff] %vm1196_vm10, %v1658_v26  ;;  %v1661_v16 = vmax.f32 %v1575_v4, 0.0  ;;  %v1567_v20 = vadd.f32 %v3233_v29, %v1566_v36  ;;  %v1630_v3 = vpop.f32.mrf.mxu1 }
 0x26e   : > { %1710 = vst.msk [vmem:[%s3242_s21 + $0x100] sm:$0xff] %vm1196_vm10, %v1674_v14  ;;  %v1677_v57 = vmax.f32 %v1639_v43, 0.0  ;;  %v1631_v45 = vadd.f32 %v3233_v29, %v1630_v3 }
 0x26f   : > { %1697 = vst.msk [vmem:[%s3242_s21 + $0x98] sm:$0xff] %vm1196_vm10, %v1661_v16  ;;  %v1659_v53 = vmax.f32 %v1567_v20, 0.0 }
 0x270   : > { %1713 = vst.msk [vmem:[%s3242_s21 + $0x118] sm:$0xff] %vm1196_vm10, %v1677_v57  ;;  %v1675_v18 = vmax.f32 %v1631_v45, 0.0 }
 0x271   : > { %1695 = vst.msk [vmem:[%s3242_s21 + $0x88] sm:$0xff] %vm1196_vm10, %v1659_v53 }
 0x272   : > { %1711 = vst.msk [vmem:[%s3242_s21 + $0x108] sm:$0xff] %vm1196_vm10, %v1675_v18 }
 0x273 PF: > { %s13_s14 = sadd.s32 1, %s2041_s14   ;;  %s3472_s12 = smov %s2037_s13 }
 0x274   : > { %p10_p5 = scmp.ge.s32.totalorder %s13_s14, 4   ;;  %s3473_s13 = smov %s3475_s15 }
 0x276   :  { %12 = sbr.rel (!%p10_p5) target bundleno = 2 (0x2), region = 62 }

</bundles_post_ra>
